<compile_context>
chip_gen: v7x
topology: tpu7x:2x2x1
jax: 0.10.0
libtpu: 0.0.40
codegen_flags: <defaults>
</compile_context>

<pallas_src>
import jax
import jax.numpy as jnp
from jax.experimental import pallas as pl
from jax.experimental.pallas import tpu as pltpu

# ----------------------------- config ---------------------------------------
VOCAB = 128
TYPE_VOCAB = 2
MAX_POS = 64
HIDDEN = 32
LAYERS = 2
HEADS = 4
HEAD_DIM = HIDDEN // HEADS
INTERMEDIATE = 64
LN_EPS = 1e-12

BATCH = 2
SEQ = 8


# ----------------------------- shared math ----------------------------------
def _gelu(x):
    # TODO(synk): HF BERT uses exact erf GELU; tanh approximation used here.
    c = 0.7978845608028654  # sqrt(2/pi)
    return 0.5 * x * (1.0 + jnp.tanh(c * (x + 0.044715 * x * x * x)))


def _layer_norm(x, g, b):
    mu = jnp.mean(x, axis=-1, keepdims=True)
    d = x - mu
    var = jnp.mean(d * d, axis=-1, keepdims=True)
    return d * jax.lax.rsqrt(var + LN_EPS) * g + b


# ----------------------------- fused kernel ----------------------------------
def _bert_forward_kernel(
    emb_ref,      # [1, S, H]   summed embeddings for this batch element
    mask_ref,     # [1, 1, S]   raw attention mask (1 = keep, 0 = masked)
    emb_g_ref, emb_b_ref,                       # [1, H]
    wqkv_ref, bqkv_ref,                         # [L, H, 3H], [L, 1, 3H]
    wo_ref, bo_ref,                             # [L, H, H],  [L, 1, H]
    ln1g_ref, ln1b_ref,                         # [L, 1, H]
    w1_ref, b1_ref,                             # [L, H, I],  [L, 1, I]
    w2_ref, b2_ref,                             # [L, I, H],  [L, 1, H]
    ln2g_ref, ln2b_ref,                         # [L, 1, H]
    out_ref,      # [1, S, H]
):
    # Embedding LayerNorm (no residual, no zero buffer).
    h = _layer_norm(emb_ref[0], emb_g_ref[...], emb_b_ref[...])      # [S, H]

    # Mask bias computed in-kernel: 0 for keep, -1e9 for masked keys.
    bias = (1.0 - mask_ref[0]) * jnp.float32(-1e9)                   # [1, S]
    scale = jnp.float32(1.0 / (HEAD_DIM ** 0.5))

    # Static layer loop: constant-index weight slices, full scheduler
    # visibility.  LAYERS is tiny, so code size is not a concern.
    for l in range(LAYERS):
        # --- fused QKV projection: one [S,H] x [H,3H] MXU pass ---
        qkv = (
            jnp.dot(h, wqkv_ref[l], preferred_element_type=jnp.float32)
            + bqkv_ref[l]
        )                                                            # [S, 3H]

        # --- per-head attention via static column slices (no transposes) ---
        head_ctx = []
        for hh in range(HEADS):
            c = hh * HEAD_DIM
            qh = qkv[:, c:c + HEAD_DIM]
            kh = qkv[:, HIDDEN + c:HIDDEN + c + HEAD_DIM]
            vh = qkv[:, 2 * HIDDEN + c:2 * HIDDEN + c + HEAD_DIM]
            # q @ k^T expressed as a contraction (no explicit transpose op).
            s = jax.lax.dot_general(
                qh, kh, (((1,), (1,)), ((), ())),
                preferred_element_type=jnp.float32,
            ) * scale + bias                                         # [S, S]
            s = s - jnp.max(s, axis=-1, keepdims=True)
            p = jnp.exp(s)
            p = p / jnp.sum(p, axis=-1, keepdims=True)
            head_ctx.append(
                jnp.dot(p, vh, preferred_element_type=jnp.float32)   # [S, Dh]
            )
        ctx = jnp.concatenate(head_ctx, axis=-1)                     # [S, H]

        # --- attention output projection + residual + LN1 ---
        attn = (
            jnp.dot(ctx, wo_ref[l], preferred_element_type=jnp.float32)
            + bo_ref[l]
        )
        h = _layer_norm(attn + h, ln1g_ref[l], ln1b_ref[l])

        # --- feed-forward + residual + LN2 ---
        ffn = _gelu(
            jnp.dot(h, w1_ref[l], preferred_element_type=jnp.float32)
            + b1_ref[l]
        )
        ffn = (
            jnp.dot(ffn, w2_ref[l], preferred_element_type=jnp.float32)
            + b2_ref[l]
        )
        h = _layer_norm(ffn + h, ln2g_ref[l], ln2b_ref[l])

    out_ref[0] = h


# ----------------------------- wrapper ---------------------------------------
def _rep2(shape):
    """Rank-2 weight: full array, ignores the batch grid index."""
    return pl.BlockSpec(shape, lambda b: (0, 0))


def _rep3(shape):
    """Rank-3 weight: full array, ignores the batch grid index."""
    return pl.BlockSpec(shape, lambda b: (0, 0, 0))


def language_model_forward(params, sentences, attentions):
    """Equivalent of LanguageModel.forward: BertModel(...)[0] -> [B, S, H]."""
    B, S = sentences.shape

    # Embedding gathers are glue (XLA); everything downstream is one kernel.
    pos_ids = jnp.arange(S, dtype=jnp.int32)
    type_ids = jnp.zeros((B, S), jnp.int32)
    emb = (
        params["word_emb"][sentences]
        + params["pos_emb"][pos_ids][None, :, :]
        + params["type_emb"][type_ids]
    ).astype(jnp.float32)                                   # [B, S, H]
    mask = attentions.astype(jnp.float32).reshape(B, 1, S)  # [B, 1, S]

    grid_spec = pltpu.PrefetchScalarGridSpec(
        num_scalar_prefetch=0,
        grid=(B,),
        in_specs=[
            pl.BlockSpec((1, S, HIDDEN), lambda b: (b, 0, 0)),   # emb
            pl.BlockSpec((1, 1, S), lambda b: (b, 0, 0)),        # mask
            _rep2((1, HIDDEN)),                                  # emb_ln_g
            _rep2((1, HIDDEN)),                                  # emb_ln_b
            _rep3((LAYERS, HIDDEN, 3 * HIDDEN)),                 # wqkv
            _rep3((LAYERS, 1, 3 * HIDDEN)),                      # bqkv
            _rep3((LAYERS, HIDDEN, HIDDEN)),                     # wo
            _rep3((LAYERS, 1, HIDDEN)),                          # bo
            _rep3((LAYERS, 1, HIDDEN)),                          # ln1_g
            _rep3((LAYERS, 1, HIDDEN)),                          # ln1_b
            _rep3((LAYERS, HIDDEN, INTERMEDIATE)),               # w1
            _rep3((LAYERS, 1, INTERMEDIATE)),                    # b1
            _rep3((LAYERS, INTERMEDIATE, HIDDEN)),               # w2
            _rep3((LAYERS, 1, HIDDEN)),                          # b2
            _rep3((LAYERS, 1, HIDDEN)),                          # ln2_g
            _rep3((LAYERS, 1, HIDDEN)),                          # ln2_b
        ],
        out_specs=pl.BlockSpec((1, S, HIDDEN), lambda b: (b, 0, 0)),
    )

    return pl.pallas_call(
        _bert_forward_kernel,
        out_shape=jax.ShapeDtypeStruct((B, S, HIDDEN), jnp.float32),
        grid_spec=grid_spec,
        compiler_params=pltpu.CompilerParams(
            dimension_semantics=("parallel",),   # shard batch over v7x's 2 TCs
        ),
    )(
        emb, mask,
        params["emb_ln_g"], params["emb_ln_b"],
        params["wqkv"], params["bqkv"], params["wo"], params["bo"],
        params["ln1_g"], params["ln1_b"],
        params["w1"], params["b1"], params["w2"], params["b2"],
        params["ln2_g"], params["ln2_b"],
    )


# ----------------------------- params ----------------------------------------
def init_params(key):
    def normal(k, shape, scale=0.02):
        return scale * jax.random.normal(k, shape, dtype=jnp.float32)

    k = jax.random.split(key, 7)
    return {
        "word_emb": normal(k[0], (VOCAB, HIDDEN)),
        "pos_emb": normal(k[1], (MAX_POS, HIDDEN)),
        "type_emb": normal(k[2], (TYPE_VOCAB, HIDDEN)),
        "emb_ln_g": jnp.ones((1, HIDDEN), jnp.float32),
        "emb_ln_b": jnp.zeros((1, HIDDEN), jnp.float32),
        # per-layer weights stacked along a leading [LAYERS] axis
        "wqkv": normal(k[3], (LAYERS, HIDDEN, 3 * HIDDEN)),
        "bqkv": jnp.zeros((LAYERS, 1, 3 * HIDDEN), jnp.float32),
        "wo": normal(k[4], (LAYERS, HIDDEN, HIDDEN)),
        "bo": jnp.zeros((LAYERS, 1, HIDDEN), jnp.float32),
        "ln1_g": jnp.ones((LAYERS, 1, HIDDEN), jnp.float32),
        "ln1_b": jnp.zeros((LAYERS, 1, HIDDEN), jnp.float32),
        "w1": normal(k[5], (LAYERS, HIDDEN, INTERMEDIATE)),
        "b1": jnp.zeros((LAYERS, 1, INTERMEDIATE), jnp.float32),
        "w2": normal(k[6], (LAYERS, INTERMEDIATE, HIDDEN)),
        "b2": jnp.zeros((LAYERS, 1, HIDDEN), jnp.float32),
        "ln2_g": jnp.ones((LAYERS, 1, HIDDEN), jnp.float32),
        "ln2_b": jnp.zeros((LAYERS, 1, HIDDEN), jnp.float32),
    }


# ----------------------------- pure-JAX reference -----------------------------
def reference_forward(params, sentences, attentions):
    B, S = sentences.shape
    pos_ids = jnp.arange(S, dtype=jnp.int32)
    type_ids = jnp.zeros((B, S), jnp.int32)
    x = (
        params["word_emb"][sentences]
        + params["pos_emb"][pos_ids][None, :, :]
        + params["type_emb"][type_ids]
    ).astype(jnp.float32)

    h = _layer_norm(x, params["emb_ln_g"], params["emb_ln_b"])
    bias = ((1.0 - attentions.astype(jnp.float32)) * -1e9)[:, None, None, :]
    scale = 1.0 / (HEAD_DIM ** 0.5)

    for l in range(LAYERS):
        qkv = jnp.einsum("bsh,hk->bsk", h, params["wqkv"][l]) + params["bqkv"][l]
        q, k, v = jnp.split(qkv, 3, axis=-1)

        def heads(t):
            return t.reshape(B, S, HEADS, HEAD_DIM).transpose(0, 2, 1, 3)

        q, k, v = heads(q), heads(k), heads(v)
        s = jnp.einsum("bhqd,bhkd->bhqk", q, k) * scale + bias
        p = jax.nn.softmax(s, axis=-1)
        ctx = (
            jnp.einsum("bhqk,bhkd->bhqd", p, v)
            .transpose(0, 2, 1, 3)
            .reshape(B, S, HIDDEN)
        )
        attn = jnp.einsum("bsh,hk->bsk", ctx, params["wo"][l]) + params["bo"][l]
        h = _layer_norm(attn + h, params["ln1_g"][l], params["ln1_b"][l])

        ffn = _gelu(jnp.einsum("bsh,hk->bsk", h, params["w1"][l]) + params["b1"][l])
        ffn = jnp.einsum("bsk,kh->bsh", ffn, params["w2"][l]) + params["b2"][l]
        h = _layer_norm(ffn + h, params["ln2_g"][l], params["ln2_b"][l])
    return h


# ----------------------------- main -------------------------------------------
if __name__ == "__main__":
    key = jax.random.PRNGKey(0)
    pkey, skey = jax.random.split(key)
    params = init_params(pkey)

    sentences = jax.random.randint(skey, (BATCH, SEQ), 0, VOCAB, dtype=jnp.int32)
    attentions = jnp.ones((BATCH, SEQ), jnp.int32).at[1, SEQ - 2:].set(0)  # mask test

    fwd = jax.jit(language_model_forward)
    out = jax.block_until_ready(fwd(params, sentences, attentions))
    assert out.shape == (BATCH, SEQ, HIDDEN)
    assert bool(jnp.all(jnp.isfinite(out)))

    # Validate against a pure-JAX reference (full-precision matmuls).
    with jax.default_matmul_precision("highest"):
        ref = jax.block_until_ready(reference_forward(params, sentences, attentions))
    assert jnp.allclose(out, ref, atol=2e-3, rtol=2e-3), (
        f"max abs err {float(jnp.max(jnp.abs(out - ref)))}"
    )

    print("KERNEL_OK")
</pallas_src>

<mosaic_0001>
module attributes {stable_mosaic.version = 11 : i64} {
  func.func @_bert_forward_kernel(%arg0: i32, %arg1: memref<1x8x32xf32, #tpu.memory_space<vmem>>, %arg2: memref<1x1x8xf32, #tpu.memory_space<vmem>>, %arg3: memref<1x32xf32, #tpu.memory_space<vmem>>, %arg4: memref<1x32xf32, #tpu.memory_space<vmem>>, %arg5: memref<2x32x96xf32, #tpu.memory_space<vmem>>, %arg6: memref<2x1x96xf32, #tpu.memory_space<vmem>>, %arg7: memref<2x32x32xf32, #tpu.memory_space<vmem>>, %arg8: memref<2x1x32xf32, #tpu.memory_space<vmem>>, %arg9: memref<2x1x32xf32, #tpu.memory_space<vmem>>, %arg10: memref<2x1x32xf32, #tpu.memory_space<vmem>>, %arg11: memref<2x32x64xf32, #tpu.memory_space<vmem>>, %arg12: memref<2x1x64xf32, #tpu.memory_space<vmem>>, %arg13: memref<2x64x32xf32, #tpu.memory_space<vmem>>, %arg14: memref<2x1x32xf32, #tpu.memory_space<vmem>>, %arg15: memref<2x1x32xf32, #tpu.memory_space<vmem>>, %arg16: memref<2x1x32xf32, #tpu.memory_space<vmem>>, %arg17: memref<1x8x32xf32, #tpu.memory_space<vmem>>) attributes {dimension_semantics = [#tpu.dimension_semantics<parallel>], iteration_bounds = array<i64: 2>, scalar_prefetch = 0 : i64, scratch_operands = 0 : i64, tpu.core_type = #tpu.core_type<tc>, window_params = [{transform_indices = @transform_0, window_bounds = array<i64: 1, 8, 32>}, {transform_indices = @transform_1, window_bounds = array<i64: 1, 1, 8>}, {pipeline_mode = #tpu.pipeline_mode<synchronous>, transform_indices = @transform_2, window_bounds = array<i64: 1, 32>}, {pipeline_mode = #tpu.pipeline_mode<synchronous>, transform_indices = @transform_3, window_bounds = array<i64: 1, 32>}, {pipeline_mode = #tpu.pipeline_mode<synchronous>, transform_indices = @transform_4, window_bounds = array<i64: 2, 32, 96>}, {pipeline_mode = #tpu.pipeline_mode<synchronous>, transform_indices = @transform_5, window_bounds = array<i64: 2, 1, 96>}, {pipeline_mode = #tpu.pipeline_mode<synchronous>, transform_indices = @transform_6, window_bounds = array<i64: 2, 32, 32>}, {pipeline_mode = #tpu.pipeline_mode<synchronous>, transform_indices = @transform_7, window_bounds = array<i64: 2, 1, 32>}, {pipeline_mode = #tpu.pipeline_mode<synchronous>, transform_indices = @transform_8, window_bounds = array<i64: 2, 1, 32>}, {pipeline_mode = #tpu.pipeline_mode<synchronous>, transform_indices = @transform_9, window_bounds = array<i64: 2, 1, 32>}, {pipeline_mode = #tpu.pipeline_mode<synchronous>, transform_indices = @transform_10, window_bounds = array<i64: 2, 32, 64>}, {pipeline_mode = #tpu.pipeline_mode<synchronous>, transform_indices = @transform_11, window_bounds = array<i64: 2, 1, 64>}, {pipeline_mode = #tpu.pipeline_mode<synchronous>, transform_indices = @transform_12, window_bounds = array<i64: 2, 64, 32>}, {pipeline_mode = #tpu.pipeline_mode<synchronous>, transform_indices = @transform_13, window_bounds = array<i64: 2, 1, 32>}, {pipeline_mode = #tpu.pipeline_mode<synchronous>, transform_indices = @transform_14, window_bounds = array<i64: 2, 1, 32>}, {pipeline_mode = #tpu.pipeline_mode<synchronous>, transform_indices = @transform_15, window_bounds = array<i64: 2, 1, 32>}, {transform_indices = @transform_16, window_bounds = array<i64: 1, 8, 32>}]} {
    %c0 = arith.constant 0 : index
    %c0_0 = arith.constant 0 : index
    %c0_1 = arith.constant 0 : index
    %0 = vector.load %arg1[%c0, %c0_0, %c0_1] : memref<1x8x32xf32, #tpu.memory_space<vmem>>, vector<1x8x32xf32>
    %1 = vector.shape_cast %0 : vector<1x8x32xf32> to vector<8x32xf32>
    %c0_2 = arith.constant 0 : index
    %c0_3 = arith.constant 0 : index
    %2 = vector.load %arg3[%c0_2, %c0_3] : memref<1x32xf32, #tpu.memory_space<vmem>>, vector<1x32xf32>
    %c0_4 = arith.constant 0 : index
    %c0_5 = arith.constant 0 : index
    %3 = vector.load %arg4[%c0_4, %c0_5] : memref<1x32xf32, #tpu.memory_space<vmem>>, vector<1x32xf32>
    %cst = arith.constant dense<0.000000e+00> : vector<8xf32>
    %4 = vector.multi_reduction <add>, %1, %cst [1] : vector<8x32xf32> to vector<8xf32>
    %5 = vector.shape_cast %4 : vector<8xf32> to vector<8x1xf32>
    %cst_6 = arith.constant 3.200000e+01 : f32
    %6 = vector.broadcast %cst_6 : f32 to vector<8x1xf32>
    %7 = arith.divf %5, %6 : vector<8x1xf32>
    %8 = vector.broadcast %7 : vector<8x1xf32> to vector<8x32xf32>
    %9 = arith.subf %1, %8 : vector<8x32xf32>
    %10 = arith.mulf %9, %9 : vector<8x32xf32>
    %cst_7 = arith.constant dense<0.000000e+00> : vector<8xf32>
    %11 = vector.multi_reduction <add>, %10, %cst_7 [1] : vector<8x32xf32> to vector<8xf32>
    %12 = vector.shape_cast %11 : vector<8xf32> to vector<8x1xf32>
    %cst_8 = arith.constant 3.200000e+01 : f32
    %13 = vector.broadcast %cst_8 : f32 to vector<8x1xf32>
    %14 = arith.divf %12, %13 : vector<8x1xf32>
    %cst_9 = arith.constant 9.99999996E-13 : f32
    %15 = vector.broadcast %cst_9 : f32 to vector<8x1xf32>
    %16 = arith.addf %14, %15 : vector<8x1xf32>
    %17 = math.rsqrt %16 : vector<8x1xf32>
    %18 = vector.broadcast %17 : vector<8x1xf32> to vector<8x32xf32>
    %19 = arith.mulf %9, %18 : vector<8x32xf32>
    %20 = vector.broadcast %2 : vector<1x32xf32> to vector<8x32xf32>
    %21 = arith.mulf %19, %20 : vector<8x32xf32>
    %22 = vector.broadcast %3 : vector<1x32xf32> to vector<8x32xf32>
    %23 = arith.addf %21, %22 : vector<8x32xf32>
    %c0_10 = arith.constant 0 : index
    %c0_11 = arith.constant 0 : index
    %c0_12 = arith.constant 0 : index
    %24 = vector.load %arg2[%c0_10, %c0_11, %c0_12] : memref<1x1x8xf32, #tpu.memory_space<vmem>>, vector<1x1x8xf32>
    %25 = vector.shape_cast %24 : vector<1x1x8xf32> to vector<1x8xf32>
    %cst_13 = arith.constant 1.000000e+00 : f32
    %26 = vector.broadcast %cst_13 : f32 to vector<1x8xf32>
    %27 = arith.subf %26, %25 : vector<1x8xf32>
    %cst_14 = arith.constant -1.000000e+09 : f32
    %28 = vector.broadcast %cst_14 : f32 to vector<1x8xf32>
    %29 = arith.mulf %27, %28 : vector<1x8xf32>
    %c0_15 = arith.constant 0 : index
    %c0_16 = arith.constant 0 : index
    %c0_17 = arith.constant 0 : index
    %30 = vector.load %arg5[%c0_15, %c0_16, %c0_17] : memref<2x32x96xf32, #tpu.memory_space<vmem>>, vector<1x32x96xf32>
    %31 = vector.shape_cast %30 : vector<1x32x96xf32> to vector<32x96xf32>
    %cst_18 = arith.constant dense<0.000000e+00> : vector<8x96xf32>
    %32 = tpu.matmul %23, %31, %cst_18 {dimension_numbers = #tpu.dot_dimension_numbers<[1], [0], [0], [1], [0, 0, 1, 1], [], []>} : vector<8x32xf32>, vector<32x96xf32>, vector<8x96xf32> -> vector<8x96xf32>
    %c0_19 = arith.constant 0 : index
    %c0_20 = arith.constant 0 : index
    %c0_21 = arith.constant 0 : index
    %33 = vector.load %arg6[%c0_19, %c0_20, %c0_21] : memref<2x1x96xf32, #tpu.memory_space<vmem>>, vector<1x1x96xf32>
    %34 = vector.shape_cast %33 : vector<1x1x96xf32> to vector<1x96xf32>
    %35 = vector.broadcast %34 : vector<1x96xf32> to vector<8x96xf32>
    %36 = arith.addf %32, %35 : vector<8x96xf32>
    %37 = vector.extract_strided_slice %36 {offsets = [0, 0], sizes = [8, 8], strides = [1, 1]} : vector<8x96xf32> to vector<8x8xf32>
    %38 = vector.extract_strided_slice %36 {offsets = [0, 32], sizes = [8, 8], strides = [1, 1]} : vector<8x96xf32> to vector<8x8xf32>
    %39 = vector.extract_strided_slice %36 {offsets = [0, 64], sizes = [8, 8], strides = [1, 1]} : vector<8x96xf32> to vector<8x8xf32>
    %cst_22 = arith.constant dense<0.000000e+00> : vector<8x8xf32>
    %40 = tpu.matmul %37, %38, %cst_22 {dimension_numbers = #tpu.dot_dimension_numbers<[1], [1], [0], [0], [0, 0, 1, 0], [], []>} : vector<8x8xf32>, vector<8x8xf32>, vector<8x8xf32> -> vector<8x8xf32>
    %cst_23 = arith.constant 0.353553385 : f32
    %41 = vector.broadcast %cst_23 : f32 to vector<8x8xf32>
    %42 = arith.mulf %40, %41 : vector<8x8xf32>
    %43 = vector.broadcast %29 : vector<1x8xf32> to vector<8x8xf32>
    %44 = arith.addf %42, %43 : vector<8x8xf32>
    %cst_24 = arith.constant dense<0xFF800000> : vector<8xf32>
    %45 = vector.multi_reduction <maximumf>, %44, %cst_24 [1] : vector<8x8xf32> to vector<8xf32>
    %46 = vector.shape_cast %45 : vector<8xf32> to vector<8x1xf32>
    %47 = vector.broadcast %46 : vector<8x1xf32> to vector<8x8xf32>
    %48 = arith.subf %44, %47 : vector<8x8xf32>
    %49 = math.exp %48 : vector<8x8xf32>
    %cst_25 = arith.constant dense<0.000000e+00> : vector<8xf32>
    %50 = vector.multi_reduction <add>, %49, %cst_25 [1] : vector<8x8xf32> to vector<8xf32>
    %51 = vector.shape_cast %50 : vector<8xf32> to vector<8x1xf32>
    %52 = vector.broadcast %51 : vector<8x1xf32> to vector<8x8xf32>
    %53 = arith.divf %49, %52 : vector<8x8xf32>
    %cst_26 = arith.constant dense<0.000000e+00> : vector<8x8xf32>
    %54 = tpu.matmul %53, %39, %cst_26 {dimension_numbers = #tpu.dot_dimension_numbers<[1], [0], [0], [1], [0, 0, 1, 1], [], []>} : vector<8x8xf32>, vector<8x8xf32>, vector<8x8xf32> -> vector<8x8xf32>
    %55 = vector.extract_strided_slice %36 {offsets = [0, 8], sizes = [8, 8], strides = [1, 1]} : vector<8x96xf32> to vector<8x8xf32>
    %56 = vector.extract_strided_slice %36 {offsets = [0, 40], sizes = [8, 8], strides = [1, 1]} : vector<8x96xf32> to vector<8x8xf32>
    %57 = vector.extract_strided_slice %36 {offsets = [0, 72], sizes = [8, 8], strides = [1, 1]} : vector<8x96xf32> to vector<8x8xf32>
    %cst_27 = arith.constant dense<0.000000e+00> : vector<8x8xf32>
    %58 = tpu.matmul %55, %56, %cst_27 {dimension_numbers = #tpu.dot_dimension_numbers<[1], [1], [0], [0], [0, 0, 1, 0], [], []>} : vector<8x8xf32>, vector<8x8xf32>, vector<8x8xf32> -> vector<8x8xf32>
    %cst_28 = arith.constant 0.353553385 : f32
    %59 = vector.broadcast %cst_28 : f32 to vector<8x8xf32>
    %60 = arith.mulf %58, %59 : vector<8x8xf32>
    %61 = vector.broadcast %29 : vector<1x8xf32> to vector<8x8xf32>
    %62 = arith.addf %60, %61 : vector<8x8xf32>
    %cst_29 = arith.constant dense<0xFF800000> : vector<8xf32>
    %63 = vector.multi_reduction <maximumf>, %62, %cst_29 [1] : vector<8x8xf32> to vector<8xf32>
    %64 = vector.shape_cast %63 : vector<8xf32> to vector<8x1xf32>
    %65 = vector.broadcast %64 : vector<8x1xf32> to vector<8x8xf32>
    %66 = arith.subf %62, %65 : vector<8x8xf32>
    %67 = math.exp %66 : vector<8x8xf32>
    %cst_30 = arith.constant dense<0.000000e+00> : vector<8xf32>
    %68 = vector.multi_reduction <add>, %67, %cst_30 [1] : vector<8x8xf32> to vector<8xf32>
    %69 = vector.shape_cast %68 : vector<8xf32> to vector<8x1xf32>
    %70 = vector.broadcast %69 : vector<8x1xf32> to vector<8x8xf32>
    %71 = arith.divf %67, %70 : vector<8x8xf32>
    %cst_31 = arith.constant dense<0.000000e+00> : vector<8x8xf32>
    %72 = tpu.matmul %71, %57, %cst_31 {dimension_numbers = #tpu.dot_dimension_numbers<[1], [0], [0], [1], [0, 0, 1, 1], [], []>} : vector<8x8xf32>, vector<8x8xf32>, vector<8x8xf32> -> vector<8x8xf32>
    %73 = vector.extract_strided_slice %36 {offsets = [0, 16], sizes = [8, 8], strides = [1, 1]} : vector<8x96xf32> to vector<8x8xf32>
    %74 = vector.extract_strided_slice %36 {offsets = [0, 48], sizes = [8, 8], strides = [1, 1]} : vector<8x96xf32> to vector<8x8xf32>
    %75 = vector.extract_strided_slice %36 {offsets = [0, 80], sizes = [8, 8], strides = [1, 1]} : vector<8x96xf32> to vector<8x8xf32>
    %cst_32 = arith.constant dense<0.000000e+00> : vector<8x8xf32>
    %76 = tpu.matmul %73, %74, %cst_32 {dimension_numbers = #tpu.dot_dimension_numbers<[1], [1], [0], [0], [0, 0, 1, 0], [], []>} : vector<8x8xf32>, vector<8x8xf32>, vector<8x8xf32> -> vector<8x8xf32>
    %cst_33 = arith.constant 0.353553385 : f32
    %77 = vector.broadcast %cst_33 : f32 to vector<8x8xf32>
    %78 = arith.mulf %76, %77 : vector<8x8xf32>
    %79 = vector.broadcast %29 : vector<1x8xf32> to vector<8x8xf32>
    %80 = arith.addf %78, %79 : vector<8x8xf32>
    %cst_34 = arith.constant dense<0xFF800000> : vector<8xf32>
    %81 = vector.multi_reduction <maximumf>, %80, %cst_34 [1] : vector<8x8xf32> to vector<8xf32>
    %82 = vector.shape_cast %81 : vector<8xf32> to vector<8x1xf32>
    %83 = vector.broadcast %82 : vector<8x1xf32> to vector<8x8xf32>
    %84 = arith.subf %80, %83 : vector<8x8xf32>
    %85 = math.exp %84 : vector<8x8xf32>
    %cst_35 = arith.constant dense<0.000000e+00> : vector<8xf32>
    %86 = vector.multi_reduction <add>, %85, %cst_35 [1] : vector<8x8xf32> to vector<8xf32>
    %87 = vector.shape_cast %86 : vector<8xf32> to vector<8x1xf32>
    %88 = vector.broadcast %87 : vector<8x1xf32> to vector<8x8xf32>
    %89 = arith.divf %85, %88 : vector<8x8xf32>
    %cst_36 = arith.constant dense<0.000000e+00> : vector<8x8xf32>
    %90 = tpu.matmul %89, %75, %cst_36 {dimension_numbers = #tpu.dot_dimension_numbers<[1], [0], [0], [1], [0, 0, 1, 1], [], []>} : vector<8x8xf32>, vector<8x8xf32>, vector<8x8xf32> -> vector<8x8xf32>
    %91 = vector.extract_strided_slice %36 {offsets = [0, 24], sizes = [8, 8], strides = [1, 1]} : vector<8x96xf32> to vector<8x8xf32>
    %92 = vector.extract_strided_slice %36 {offsets = [0, 56], sizes = [8, 8], strides = [1, 1]} : vector<8x96xf32> to vector<8x8xf32>
    %93 = vector.extract_strided_slice %36 {offsets = [0, 88], sizes = [8, 8], strides = [1, 1]} : vector<8x96xf32> to vector<8x8xf32>
    %cst_37 = arith.constant dense<0.000000e+00> : vector<8x8xf32>
    %94 = tpu.matmul %91, %92, %cst_37 {dimension_numbers = #tpu.dot_dimension_numbers<[1], [1], [0], [0], [0, 0, 1, 0], [], []>} : vector<8x8xf32>, vector<8x8xf32>, vector<8x8xf32> -> vector<8x8xf32>
    %cst_38 = arith.constant 0.353553385 : f32
    %95 = vector.broadcast %cst_38 : f32 to vector<8x8xf32>
    %96 = arith.mulf %94, %95 : vector<8x8xf32>
    %97 = vector.broadcast %29 : vector<1x8xf32> to vector<8x8xf32>
    %98 = arith.addf %96, %97 : vector<8x8xf32>
    %cst_39 = arith.constant dense<0xFF800000> : vector<8xf32>
    %99 = vector.multi_reduction <maximumf>, %98, %cst_39 [1] : vector<8x8xf32> to vector<8xf32>
    %100 = vector.shape_cast %99 : vector<8xf32> to vector<8x1xf32>
    %101 = vector.broadcast %100 : vector<8x1xf32> to vector<8x8xf32>
    %102 = arith.subf %98, %101 : vector<8x8xf32>
    %103 = math.exp %102 : vector<8x8xf32>
    %cst_40 = arith.constant dense<0.000000e+00> : vector<8xf32>
    %104 = vector.multi_reduction <add>, %103, %cst_40 [1] : vector<8x8xf32> to vector<8xf32>
    %105 = vector.shape_cast %104 : vector<8xf32> to vector<8x1xf32>
    %106 = vector.broadcast %105 : vector<8x1xf32> to vector<8x8xf32>
    %107 = arith.divf %103, %106 : vector<8x8xf32>
    %cst_41 = arith.constant dense<0.000000e+00> : vector<8x8xf32>
    %108 = tpu.matmul %107, %93, %cst_41 {dimension_numbers = #tpu.dot_dimension_numbers<[1], [0], [0], [1], [0, 0, 1, 1], [], []>} : vector<8x8xf32>, vector<8x8xf32>, vector<8x8xf32> -> vector<8x8xf32>
    %109 = tpu.concatenate %54, %72, %90, %108 in 1 : vector<8x8xf32>, vector<8x8xf32>, vector<8x8xf32>, vector<8x8xf32> -> vector<8x32xf32>
    %c0_42 = arith.constant 0 : index
    %c0_43 = arith.constant 0 : index
    %c0_44 = arith.constant 0 : index
    %110 = vector.load %arg7[%c0_42, %c0_43, %c0_44] : memref<2x32x32xf32, #tpu.memory_space<vmem>>, vector<1x32x32xf32>
    %111 = vector.shape_cast %110 : vector<1x32x32xf32> to vector<32x32xf32>
    %cst_45 = arith.constant dense<0.000000e+00> : vector<8x32xf32>
    %112 = tpu.matmul %109, %111, %cst_45 {dimension_numbers = #tpu.dot_dimension_numbers<[1], [0], [0], [1], [0, 0, 1, 1], [], []>} : vector<8x32xf32>, vector<32x32xf32>, vector<8x32xf32> -> vector<8x32xf32>
    %c0_46 = arith.constant 0 : index
    %c0_47 = arith.constant 0 : index
    %c0_48 = arith.constant 0 : index
    %113 = vector.load %arg8[%c0_46, %c0_47, %c0_48] : memref<2x1x32xf32, #tpu.memory_space<vmem>>, vector<1x1x32xf32>
    %114 = vector.shape_cast %113 : vector<1x1x32xf32> to vector<1x32xf32>
    %115 = vector.broadcast %114 : vector<1x32xf32> to vector<8x32xf32>
    %116 = arith.addf %112, %115 : vector<8x32xf32>
    %117 = arith.addf %116, %23 : vector<8x32xf32>
    %c0_49 = arith.constant 0 : index
    %c0_50 = arith.constant 0 : index
    %c0_51 = arith.constant 0 : index
    %118 = vector.load %arg9[%c0_49, %c0_50, %c0_51] : memref<2x1x32xf32, #tpu.memory_space<vmem>>, vector<1x1x32xf32>
    %119 = vector.shape_cast %118 : vector<1x1x32xf32> to vector<1x32xf32>
    %c0_52 = arith.constant 0 : index
    %c0_53 = arith.constant 0 : index
    %c0_54 = arith.constant 0 : index
    %120 = vector.load %arg10[%c0_52, %c0_53, %c0_54] : memref<2x1x32xf32, #tpu.memory_space<vmem>>, vector<1x1x32xf32>
    %121 = vector.shape_cast %120 : vector<1x1x32xf32> to vector<1x32xf32>
    %cst_55 = arith.constant dense<0.000000e+00> : vector<8xf32>
    %122 = vector.multi_reduction <add>, %117, %cst_55 [1] : vector<8x32xf32> to vector<8xf32>
    %123 = vector.shape_cast %122 : vector<8xf32> to vector<8x1xf32>
    %cst_56 = arith.constant 3.200000e+01 : f32
    %124 = vector.broadcast %cst_56 : f32 to vector<8x1xf32>
    %125 = arith.divf %123, %124 : vector<8x1xf32>
    %126 = vector.broadcast %125 : vector<8x1xf32> to vector<8x32xf32>
    %127 = arith.subf %117, %126 : vector<8x32xf32>
    %128 = arith.mulf %127, %127 : vector<8x32xf32>
    %cst_57 = arith.constant dense<0.000000e+00> : vector<8xf32>
    %129 = vector.multi_reduction <add>, %128, %cst_57 [1] : vector<8x32xf32> to vector<8xf32>
    %130 = vector.shape_cast %129 : vector<8xf32> to vector<8x1xf32>
    %cst_58 = arith.constant 3.200000e+01 : f32
    %131 = vector.broadcast %cst_58 : f32 to vector<8x1xf32>
    %132 = arith.divf %130, %131 : vector<8x1xf32>
    %cst_59 = arith.constant 9.99999996E-13 : f32
    %133 = vector.broadcast %cst_59 : f32 to vector<8x1xf32>
    %134 = arith.addf %132, %133 : vector<8x1xf32>
    %135 = math.rsqrt %134 : vector<8x1xf32>
    %136 = vector.broadcast %135 : vector<8x1xf32> to vector<8x32xf32>
    %137 = arith.mulf %127, %136 : vector<8x32xf32>
    %138 = vector.broadcast %119 : vector<1x32xf32> to vector<8x32xf32>
    %139 = arith.mulf %137, %138 : vector<8x32xf32>
    %140 = vector.broadcast %121 : vector<1x32xf32> to vector<8x32xf32>
    %141 = arith.addf %139, %140 : vector<8x32xf32>
    %c0_60 = arith.constant 0 : index
    %c0_61 = arith.constant 0 : index
    %c0_62 = arith.constant 0 : index
    %142 = vector.load %arg11[%c0_60, %c0_61, %c0_62] : memref<2x32x64xf32, #tpu.memory_space<vmem>>, vector<1x32x64xf32>
    %143 = vector.shape_cast %142 : vector<1x32x64xf32> to vector<32x64xf32>
    %cst_63 = arith.constant dense<0.000000e+00> : vector<8x64xf32>
    %144 = tpu.matmul %141, %143, %cst_63 {dimension_numbers = #tpu.dot_dimension_numbers<[1], [0], [0], [1], [0, 0, 1, 1], [], []>} : vector<8x32xf32>, vector<32x64xf32>, vector<8x64xf32> -> vector<8x64xf32>
    %c0_64 = arith.constant 0 : index
    %c0_65 = arith.constant 0 : index
    %c0_66 = arith.constant 0 : index
    %145 = vector.load %arg12[%c0_64, %c0_65, %c0_66] : memref<2x1x64xf32, #tpu.memory_space<vmem>>, vector<1x1x64xf32>
    %146 = vector.shape_cast %145 : vector<1x1x64xf32> to vector<1x64xf32>
    %147 = vector.broadcast %146 : vector<1x64xf32> to vector<8x64xf32>
    %148 = arith.addf %144, %147 : vector<8x64xf32>
    %cst_67 = arith.constant 5.000000e-01 : f32
    %149 = vector.broadcast %cst_67 : f32 to vector<8x64xf32>
    %150 = arith.mulf %149, %148 : vector<8x64xf32>
    %cst_68 = arith.constant 4.471500e-02 : f32
    %151 = vector.broadcast %cst_68 : f32 to vector<8x64xf32>
    %152 = arith.mulf %151, %148 : vector<8x64xf32>
    %153 = arith.mulf %152, %148 : vector<8x64xf32>
    %154 = arith.mulf %153, %148 : vector<8x64xf32>
    %155 = arith.addf %148, %154 : vector<8x64xf32>
    %cst_69 = arith.constant 0.797884583 : f32
    %156 = vector.broadcast %cst_69 : f32 to vector<8x64xf32>
    %157 = arith.mulf %156, %155 : vector<8x64xf32>
    %158 = math.tanh %157 : vector<8x64xf32>
    %cst_70 = arith.constant 1.000000e+00 : f32
    %159 = vector.broadcast %cst_70 : f32 to vector<8x64xf32>
    %160 = arith.addf %159, %158 : vector<8x64xf32>
    %161 = arith.mulf %150, %160 : vector<8x64xf32>
    %c0_71 = arith.constant 0 : index
    %c0_72 = arith.constant 0 : index
    %c0_73 = arith.constant 0 : index
    %162 = vector.load %arg13[%c0_71, %c0_72, %c0_73] : memref<2x64x32xf32, #tpu.memory_space<vmem>>, vector<1x64x32xf32>
    %163 = vector.shape_cast %162 : vector<1x64x32xf32> to vector<64x32xf32>
    %cst_74 = arith.constant dense<0.000000e+00> : vector<8x32xf32>
    %164 = tpu.matmul %161, %163, %cst_74 {dimension_numbers = #tpu.dot_dimension_numbers<[1], [0], [0], [1], [0, 0, 1, 1], [], []>} : vector<8x64xf32>, vector<64x32xf32>, vector<8x32xf32> -> vector<8x32xf32>
    %c0_75 = arith.constant 0 : index
    %c0_76 = arith.constant 0 : index
    %c0_77 = arith.constant 0 : index
    %165 = vector.load %arg14[%c0_75, %c0_76, %c0_77] : memref<2x1x32xf32, #tpu.memory_space<vmem>>, vector<1x1x32xf32>
    %166 = vector.shape_cast %165 : vector<1x1x32xf32> to vector<1x32xf32>
    %167 = vector.broadcast %166 : vector<1x32xf32> to vector<8x32xf32>
    %168 = arith.addf %164, %167 : vector<8x32xf32>
    %169 = arith.addf %168, %141 : vector<8x32xf32>
    %c0_78 = arith.constant 0 : index
    %c0_79 = arith.constant 0 : index
    %c0_80 = arith.constant 0 : index
    %170 = vector.load %arg15[%c0_78, %c0_79, %c0_80] : memref<2x1x32xf32, #tpu.memory_space<vmem>>, vector<1x1x32xf32>
    %171 = vector.shape_cast %170 : vector<1x1x32xf32> to vector<1x32xf32>
    %c0_81 = arith.constant 0 : index
    %c0_82 = arith.constant 0 : index
    %c0_83 = arith.constant 0 : index
    %172 = vector.load %arg16[%c0_81, %c0_82, %c0_83] : memref<2x1x32xf32, #tpu.memory_space<vmem>>, vector<1x1x32xf32>
    %173 = vector.shape_cast %172 : vector<1x1x32xf32> to vector<1x32xf32>
    %cst_84 = arith.constant dense<0.000000e+00> : vector<8xf32>
    %174 = vector.multi_reduction <add>, %169, %cst_84 [1] : vector<8x32xf32> to vector<8xf32>
    %175 = vector.shape_cast %174 : vector<8xf32> to vector<8x1xf32>
    %cst_85 = arith.constant 3.200000e+01 : f32
    %176 = vector.broadcast %cst_85 : f32 to vector<8x1xf32>
    %177 = arith.divf %175, %176 : vector<8x1xf32>
    %178 = vector.broadcast %177 : vector<8x1xf32> to vector<8x32xf32>
    %179 = arith.subf %169, %178 : vector<8x32xf32>
    %180 = arith.mulf %179, %179 : vector<8x32xf32>
    %cst_86 = arith.constant dense<0.000000e+00> : vector<8xf32>
    %181 = vector.multi_reduction <add>, %180, %cst_86 [1] : vector<8x32xf32> to vector<8xf32>
    %182 = vector.shape_cast %181 : vector<8xf32> to vector<8x1xf32>
    %cst_87 = arith.constant 3.200000e+01 : f32
    %183 = vector.broadcast %cst_87 : f32 to vector<8x1xf32>
    %184 = arith.divf %182, %183 : vector<8x1xf32>
    %cst_88 = arith.constant 9.99999996E-13 : f32
    %185 = vector.broadcast %cst_88 : f32 to vector<8x1xf32>
    %186 = arith.addf %184, %185 : vector<8x1xf32>
    %187 = math.rsqrt %186 : vector<8x1xf32>
    %188 = vector.broadcast %187 : vector<8x1xf32> to vector<8x32xf32>
    %189 = arith.mulf %179, %188 : vector<8x32xf32>
    %190 = vector.broadcast %171 : vector<1x32xf32> to vector<8x32xf32>
    %191 = arith.mulf %189, %190 : vector<8x32xf32>
    %192 = vector.broadcast %173 : vector<1x32xf32> to vector<8x32xf32>
    %193 = arith.addf %191, %192 : vector<8x32xf32>
    %c1 = arith.constant 1 : index
    %c0_89 = arith.constant 0 : index
    %c0_90 = arith.constant 0 : index
    %194 = vector.load %arg5[%c1, %c0_89, %c0_90] : memref<2x32x96xf32, #tpu.memory_space<vmem>>, vector<1x32x96xf32>
    %195 = vector.shape_cast %194 : vector<1x32x96xf32> to vector<32x96xf32>
    %cst_91 = arith.constant dense<0.000000e+00> : vector<8x96xf32>
    %196 = tpu.matmul %193, %195, %cst_91 {dimension_numbers = #tpu.dot_dimension_numbers<[1], [0], [0], [1], [0, 0, 1, 1], [], []>} : vector<8x32xf32>, vector<32x96xf32>, vector<8x96xf32> -> vector<8x96xf32>
    %c1_92 = arith.constant 1 : index
    %c0_93 = arith.constant 0 : index
    %c0_94 = arith.constant 0 : index
    %197 = vector.load %arg6[%c1_92, %c0_93, %c0_94] : memref<2x1x96xf32, #tpu.memory_space<vmem>>, vector<1x1x96xf32>
    %198 = vector.shape_cast %197 : vector<1x1x96xf32> to vector<1x96xf32>
    %199 = vector.broadcast %198 : vector<1x96xf32> to vector<8x96xf32>
    %200 = arith.addf %196, %199 : vector<8x96xf32>
    %201 = vector.extract_strided_slice %200 {offsets = [0, 0], sizes = [8, 8], strides = [1, 1]} : vector<8x96xf32> to vector<8x8xf32>
    %202 = vector.extract_strided_slice %200 {offsets = [0, 32], sizes = [8, 8], strides = [1, 1]} : vector<8x96xf32> to vector<8x8xf32>
    %203 = vector.extract_strided_slice %200 {offsets = [0, 64], sizes = [8, 8], strides = [1, 1]} : vector<8x96xf32> to vector<8x8xf32>
    %cst_95 = arith.constant dense<0.000000e+00> : vector<8x8xf32>
    %204 = tpu.matmul %201, %202, %cst_95 {dimension_numbers = #tpu.dot_dimension_numbers<[1], [1], [0], [0], [0, 0, 1, 0], [], []>} : vector<8x8xf32>, vector<8x8xf32>, vector<8x8xf32> -> vector<8x8xf32>
    %cst_96 = arith.constant 0.353553385 : f32
    %205 = vector.broadcast %cst_96 : f32 to vector<8x8xf32>
    %206 = arith.mulf %204, %205 : vector<8x8xf32>
    %207 = vector.broadcast %29 : vector<1x8xf32> to vector<8x8xf32>
    %208 = arith.addf %206, %207 : vector<8x8xf32>
    %cst_97 = arith.constant dense<0xFF800000> : vector<8xf32>
    %209 = vector.multi_reduction <maximumf>, %208, %cst_97 [1] : vector<8x8xf32> to vector<8xf32>
    %210 = vector.shape_cast %209 : vector<8xf32> to vector<8x1xf32>
    %211 = vector.broadcast %210 : vector<8x1xf32> to vector<8x8xf32>
    %212 = arith.subf %208, %211 : vector<8x8xf32>
    %213 = math.exp %212 : vector<8x8xf32>
    %cst_98 = arith.constant dense<0.000000e+00> : vector<8xf32>
    %214 = vector.multi_reduction <add>, %213, %cst_98 [1] : vector<8x8xf32> to vector<8xf32>
    %215 = vector.shape_cast %214 : vector<8xf32> to vector<8x1xf32>
    %216 = vector.broadcast %215 : vector<8x1xf32> to vector<8x8xf32>
    %217 = arith.divf %213, %216 : vector<8x8xf32>
    %cst_99 = arith.constant dense<0.000000e+00> : vector<8x8xf32>
    %218 = tpu.matmul %217, %203, %cst_99 {dimension_numbers = #tpu.dot_dimension_numbers<[1], [0], [0], [1], [0, 0, 1, 1], [], []>} : vector<8x8xf32>, vector<8x8xf32>, vector<8x8xf32> -> vector<8x8xf32>
    %219 = vector.extract_strided_slice %200 {offsets = [0, 8], sizes = [8, 8], strides = [1, 1]} : vector<8x96xf32> to vector<8x8xf32>
    %220 = vector.extract_strided_slice %200 {offsets = [0, 40], sizes = [8, 8], strides = [1, 1]} : vector<8x96xf32> to vector<8x8xf32>
    %221 = vector.extract_strided_slice %200 {offsets = [0, 72], sizes = [8, 8], strides = [1, 1]} : vector<8x96xf32> to vector<8x8xf32>
    %cst_100 = arith.constant dense<0.000000e+00> : vector<8x8xf32>
    %222 = tpu.matmul %219, %220, %cst_100 {dimension_numbers = #tpu.dot_dimension_numbers<[1], [1], [0], [0], [0, 0, 1, 0], [], []>} : vector<8x8xf32>, vector<8x8xf32>, vector<8x8xf32> -> vector<8x8xf32>
    %cst_101 = arith.constant 0.353553385 : f32
    %223 = vector.broadcast %cst_101 : f32 to vector<8x8xf32>
    %224 = arith.mulf %222, %223 : vector<8x8xf32>
    %225 = vector.broadcast %29 : vector<1x8xf32> to vector<8x8xf32>
    %226 = arith.addf %224, %225 : vector<8x8xf32>
    %cst_102 = arith.constant dense<0xFF800000> : vector<8xf32>
    %227 = vector.multi_reduction <maximumf>, %226, %cst_102 [1] : vector<8x8xf32> to vector<8xf32>
    %228 = vector.shape_cast %227 : vector<8xf32> to vector<8x1xf32>
    %229 = vector.broadcast %228 : vector<8x1xf32> to vector<8x8xf32>
    %230 = arith.subf %226, %229 : vector<8x8xf32>
    %231 = math.exp %230 : vector<8x8xf32>
    %cst_103 = arith.constant dense<0.000000e+00> : vector<8xf32>
    %232 = vector.multi_reduction <add>, %231, %cst_103 [1] : vector<8x8xf32> to vector<8xf32>
    %233 = vector.shape_cast %232 : vector<8xf32> to vector<8x1xf32>
    %234 = vector.broadcast %233 : vector<8x1xf32> to vector<8x8xf32>
    %235 = arith.divf %231, %234 : vector<8x8xf32>
    %cst_104 = arith.constant dense<0.000000e+00> : vector<8x8xf32>
    %236 = tpu.matmul %235, %221, %cst_104 {dimension_numbers = #tpu.dot_dimension_numbers<[1], [0], [0], [1], [0, 0, 1, 1], [], []>} : vector<8x8xf32>, vector<8x8xf32>, vector<8x8xf32> -> vector<8x8xf32>
    %237 = vector.extract_strided_slice %200 {offsets = [0, 16], sizes = [8, 8], strides = [1, 1]} : vector<8x96xf32> to vector<8x8xf32>
    %238 = vector.extract_strided_slice %200 {offsets = [0, 48], sizes = [8, 8], strides = [1, 1]} : vector<8x96xf32> to vector<8x8xf32>
    %239 = vector.extract_strided_slice %200 {offsets = [0, 80], sizes = [8, 8], strides = [1, 1]} : vector<8x96xf32> to vector<8x8xf32>
    %cst_105 = arith.constant dense<0.000000e+00> : vector<8x8xf32>
    %240 = tpu.matmul %237, %238, %cst_105 {dimension_numbers = #tpu.dot_dimension_numbers<[1], [1], [0], [0], [0, 0, 1, 0], [], []>} : vector<8x8xf32>, vector<8x8xf32>, vector<8x8xf32> -> vector<8x8xf32>
    %cst_106 = arith.constant 0.353553385 : f32
    %241 = vector.broadcast %cst_106 : f32 to vector<8x8xf32>
    %242 = arith.mulf %240, %241 : vector<8x8xf32>
    %243 = vector.broadcast %29 : vector<1x8xf32> to vector<8x8xf32>
    %244 = arith.addf %242, %243 : vector<8x8xf32>
    %cst_107 = arith.constant dense<0xFF800000> : vector<8xf32>
    %245 = vector.multi_reduction <maximumf>, %244, %cst_107 [1] : vector<8x8xf32> to vector<8xf32>
    %246 = vector.shape_cast %245 : vector<8xf32> to vector<8x1xf32>
    %247 = vector.broadcast %246 : vector<8x1xf32> to vector<8x8xf32>
    %248 = arith.subf %244, %247 : vector<8x8xf32>
    %249 = math.exp %248 : vector<8x8xf32>
    %cst_108 = arith.constant dense<0.000000e+00> : vector<8xf32>
    %250 = vector.multi_reduction <add>, %249, %cst_108 [1] : vector<8x8xf32> to vector<8xf32>
    %251 = vector.shape_cast %250 : vector<8xf32> to vector<8x1xf32>
    %252 = vector.broadcast %251 : vector<8x1xf32> to vector<8x8xf32>
    %253 = arith.divf %249, %252 : vector<8x8xf32>
    %cst_109 = arith.constant dense<0.000000e+00> : vector<8x8xf32>
    %254 = tpu.matmul %253, %239, %cst_109 {dimension_numbers = #tpu.dot_dimension_numbers<[1], [0], [0], [1], [0, 0, 1, 1], [], []>} : vector<8x8xf32>, vector<8x8xf32>, vector<8x8xf32> -> vector<8x8xf32>
    %255 = vector.extract_strided_slice %200 {offsets = [0, 24], sizes = [8, 8], strides = [1, 1]} : vector<8x96xf32> to vector<8x8xf32>
    %256 = vector.extract_strided_slice %200 {offsets = [0, 56], sizes = [8, 8], strides = [1, 1]} : vector<8x96xf32> to vector<8x8xf32>
    %257 = vector.extract_strided_slice %200 {offsets = [0, 88], sizes = [8, 8], strides = [1, 1]} : vector<8x96xf32> to vector<8x8xf32>
    %cst_110 = arith.constant dense<0.000000e+00> : vector<8x8xf32>
    %258 = tpu.matmul %255, %256, %cst_110 {dimension_numbers = #tpu.dot_dimension_numbers<[1], [1], [0], [0], [0, 0, 1, 0], [], []>} : vector<8x8xf32>, vector<8x8xf32>, vector<8x8xf32> -> vector<8x8xf32>
    %cst_111 = arith.constant 0.353553385 : f32
    %259 = vector.broadcast %cst_111 : f32 to vector<8x8xf32>
    %260 = arith.mulf %258, %259 : vector<8x8xf32>
    %261 = vector.broadcast %29 : vector<1x8xf32> to vector<8x8xf32>
    %262 = arith.addf %260, %261 : vector<8x8xf32>
    %cst_112 = arith.constant dense<0xFF800000> : vector<8xf32>
    %263 = vector.multi_reduction <maximumf>, %262, %cst_112 [1] : vector<8x8xf32> to vector<8xf32>
    %264 = vector.shape_cast %263 : vector<8xf32> to vector<8x1xf32>
    %265 = vector.broadcast %264 : vector<8x1xf32> to vector<8x8xf32>
    %266 = arith.subf %262, %265 : vector<8x8xf32>
    %267 = math.exp %266 : vector<8x8xf32>
    %cst_113 = arith.constant dense<0.000000e+00> : vector<8xf32>
    %268 = vector.multi_reduction <add>, %267, %cst_113 [1] : vector<8x8xf32> to vector<8xf32>
    %269 = vector.shape_cast %268 : vector<8xf32> to vector<8x1xf32>
    %270 = vector.broadcast %269 : vector<8x1xf32> to vector<8x8xf32>
    %271 = arith.divf %267, %270 : vector<8x8xf32>
    %cst_114 = arith.constant dense<0.000000e+00> : vector<8x8xf32>
    %272 = tpu.matmul %271, %257, %cst_114 {dimension_numbers = #tpu.dot_dimension_numbers<[1], [0], [0], [1], [0, 0, 1, 1], [], []>} : vector<8x8xf32>, vector<8x8xf32>, vector<8x8xf32> -> vector<8x8xf32>
    %273 = tpu.concatenate %218, %236, %254, %272 in 1 : vector<8x8xf32>, vector<8x8xf32>, vector<8x8xf32>, vector<8x8xf32> -> vector<8x32xf32>
    %c1_115 = arith.constant 1 : index
    %c0_116 = arith.constant 0 : index
    %c0_117 = arith.constant 0 : index
    %274 = vector.load %arg7[%c1_115, %c0_116, %c0_117] : memref<2x32x32xf32, #tpu.memory_space<vmem>>, vector<1x32x32xf32>
    %275 = vector.shape_cast %274 : vector<1x32x32xf32> to vector<32x32xf32>
    %cst_118 = arith.constant dense<0.000000e+00> : vector<8x32xf32>
    %276 = tpu.matmul %273, %275, %cst_118 {dimension_numbers = #tpu.dot_dimension_numbers<[1], [0], [0], [1], [0, 0, 1, 1], [], []>} : vector<8x32xf32>, vector<32x32xf32>, vector<8x32xf32> -> vector<8x32xf32>
    %c1_119 = arith.constant 1 : index
    %c0_120 = arith.constant 0 : index
    %c0_121 = arith.constant 0 : index
    %277 = vector.load %arg8[%c1_119, %c0_120, %c0_121] : memref<2x1x32xf32, #tpu.memory_space<vmem>>, vector<1x1x32xf32>
    %278 = vector.shape_cast %277 : vector<1x1x32xf32> to vector<1x32xf32>
    %279 = vector.broadcast %278 : vector<1x32xf32> to vector<8x32xf32>
    %280 = arith.addf %276, %279 : vector<8x32xf32>
    %281 = arith.addf %280, %193 : vector<8x32xf32>
    %c1_122 = arith.constant 1 : index
    %c0_123 = arith.constant 0 : index
    %c0_124 = arith.constant 0 : index
    %282 = vector.load %arg9[%c1_122, %c0_123, %c0_124] : memref<2x1x32xf32, #tpu.memory_space<vmem>>, vector<1x1x32xf32>
    %283 = vector.shape_cast %282 : vector<1x1x32xf32> to vector<1x32xf32>
    %c1_125 = arith.constant 1 : index
    %c0_126 = arith.constant 0 : index
    %c0_127 = arith.constant 0 : index
    %284 = vector.load %arg10[%c1_125, %c0_126, %c0_127] : memref<2x1x32xf32, #tpu.memory_space<vmem>>, vector<1x1x32xf32>
    %285 = vector.shape_cast %284 : vector<1x1x32xf32> to vector<1x32xf32>
    %cst_128 = arith.constant dense<0.000000e+00> : vector<8xf32>
    %286 = vector.multi_reduction <add>, %281, %cst_128 [1] : vector<8x32xf32> to vector<8xf32>
    %287 = vector.shape_cast %286 : vector<8xf32> to vector<8x1xf32>
    %cst_129 = arith.constant 3.200000e+01 : f32
    %288 = vector.broadcast %cst_129 : f32 to vector<8x1xf32>
    %289 = arith.divf %287, %288 : vector<8x1xf32>
    %290 = vector.broadcast %289 : vector<8x1xf32> to vector<8x32xf32>
    %291 = arith.subf %281, %290 : vector<8x32xf32>
    %292 = arith.mulf %291, %291 : vector<8x32xf32>
    %cst_130 = arith.constant dense<0.000000e+00> : vector<8xf32>
    %293 = vector.multi_reduction <add>, %292, %cst_130 [1] : vector<8x32xf32> to vector<8xf32>
    %294 = vector.shape_cast %293 : vector<8xf32> to vector<8x1xf32>
    %cst_131 = arith.constant 3.200000e+01 : f32
    %295 = vector.broadcast %cst_131 : f32 to vector<8x1xf32>
    %296 = arith.divf %294, %295 : vector<8x1xf32>
    %cst_132 = arith.constant 9.99999996E-13 : f32
    %297 = vector.broadcast %cst_132 : f32 to vector<8x1xf32>
    %298 = arith.addf %296, %297 : vector<8x1xf32>
    %299 = math.rsqrt %298 : vector<8x1xf32>
    %300 = vector.broadcast %299 : vector<8x1xf32> to vector<8x32xf32>
    %301 = arith.mulf %291, %300 : vector<8x32xf32>
    %302 = vector.broadcast %283 : vector<1x32xf32> to vector<8x32xf32>
    %303 = arith.mulf %301, %302 : vector<8x32xf32>
    %304 = vector.broadcast %285 : vector<1x32xf32> to vector<8x32xf32>
    %305 = arith.addf %303, %304 : vector<8x32xf32>
    %c1_133 = arith.constant 1 : index
    %c0_134 = arith.constant 0 : index
    %c0_135 = arith.constant 0 : index
    %306 = vector.load %arg11[%c1_133, %c0_134, %c0_135] : memref<2x32x64xf32, #tpu.memory_space<vmem>>, vector<1x32x64xf32>
    %307 = vector.shape_cast %306 : vector<1x32x64xf32> to vector<32x64xf32>
    %cst_136 = arith.constant dense<0.000000e+00> : vector<8x64xf32>
    %308 = tpu.matmul %305, %307, %cst_136 {dimension_numbers = #tpu.dot_dimension_numbers<[1], [0], [0], [1], [0, 0, 1, 1], [], []>} : vector<8x32xf32>, vector<32x64xf32>, vector<8x64xf32> -> vector<8x64xf32>
    %c1_137 = arith.constant 1 : index
    %c0_138 = arith.constant 0 : index
    %c0_139 = arith.constant 0 : index
    %309 = vector.load %arg12[%c1_137, %c0_138, %c0_139] : memref<2x1x64xf32, #tpu.memory_space<vmem>>, vector<1x1x64xf32>
    %310 = vector.shape_cast %309 : vector<1x1x64xf32> to vector<1x64xf32>
    %311 = vector.broadcast %310 : vector<1x64xf32> to vector<8x64xf32>
    %312 = arith.addf %308, %311 : vector<8x64xf32>
    %cst_140 = arith.constant 5.000000e-01 : f32
    %313 = vector.broadcast %cst_140 : f32 to vector<8x64xf32>
    %314 = arith.mulf %313, %312 : vector<8x64xf32>
    %cst_141 = arith.constant 4.471500e-02 : f32
    %315 = vector.broadcast %cst_141 : f32 to vector<8x64xf32>
    %316 = arith.mulf %315, %312 : vector<8x64xf32>
    %317 = arith.mulf %316, %312 : vector<8x64xf32>
    %318 = arith.mulf %317, %312 : vector<8x64xf32>
    %319 = arith.addf %312, %318 : vector<8x64xf32>
    %cst_142 = arith.constant 0.797884583 : f32
    %320 = vector.broadcast %cst_142 : f32 to vector<8x64xf32>
    %321 = arith.mulf %320, %319 : vector<8x64xf32>
    %322 = math.tanh %321 : vector<8x64xf32>
    %cst_143 = arith.constant 1.000000e+00 : f32
    %323 = vector.broadcast %cst_143 : f32 to vector<8x64xf32>
    %324 = arith.addf %323, %322 : vector<8x64xf32>
    %325 = arith.mulf %314, %324 : vector<8x64xf32>
    %c1_144 = arith.constant 1 : index
    %c0_145 = arith.constant 0 : index
    %c0_146 = arith.constant 0 : index
    %326 = vector.load %arg13[%c1_144, %c0_145, %c0_146] : memref<2x64x32xf32, #tpu.memory_space<vmem>>, vector<1x64x32xf32>
    %327 = vector.shape_cast %326 : vector<1x64x32xf32> to vector<64x32xf32>
    %cst_147 = arith.constant dense<0.000000e+00> : vector<8x32xf32>
    %328 = tpu.matmul %325, %327, %cst_147 {dimension_numbers = #tpu.dot_dimension_numbers<[1], [0], [0], [1], [0, 0, 1, 1], [], []>} : vector<8x64xf32>, vector<64x32xf32>, vector<8x32xf32> -> vector<8x32xf32>
    %c1_148 = arith.constant 1 : index
    %c0_149 = arith.constant 0 : index
    %c0_150 = arith.constant 0 : index
    %329 = vector.load %arg14[%c1_148, %c0_149, %c0_150] : memref<2x1x32xf32, #tpu.memory_space<vmem>>, vector<1x1x32xf32>
    %330 = vector.shape_cast %329 : vector<1x1x32xf32> to vector<1x32xf32>
    %331 = vector.broadcast %330 : vector<1x32xf32> to vector<8x32xf32>
    %332 = arith.addf %328, %331 : vector<8x32xf32>
    %333 = arith.addf %332, %305 : vector<8x32xf32>
    %c1_151 = arith.constant 1 : index
    %c0_152 = arith.constant 0 : index
    %c0_153 = arith.constant 0 : index
    %334 = vector.load %arg15[%c1_151, %c0_152, %c0_153] : memref<2x1x32xf32, #tpu.memory_space<vmem>>, vector<1x1x32xf32>
    %335 = vector.shape_cast %334 : vector<1x1x32xf32> to vector<1x32xf32>
    %c1_154 = arith.constant 1 : index
    %c0_155 = arith.constant 0 : index
    %c0_156 = arith.constant 0 : index
    %336 = vector.load %arg16[%c1_154, %c0_155, %c0_156] : memref<2x1x32xf32, #tpu.memory_space<vmem>>, vector<1x1x32xf32>
    %337 = vector.shape_cast %336 : vector<1x1x32xf32> to vector<1x32xf32>
    %cst_157 = arith.constant dense<0.000000e+00> : vector<8xf32>
    %338 = vector.multi_reduction <add>, %333, %cst_157 [1] : vector<8x32xf32> to vector<8xf32>
    %339 = vector.shape_cast %338 : vector<8xf32> to vector<8x1xf32>
    %cst_158 = arith.constant 3.200000e+01 : f32
    %340 = vector.broadcast %cst_158 : f32 to vector<8x1xf32>
    %341 = arith.divf %339, %340 : vector<8x1xf32>
    %342 = vector.broadcast %341 : vector<8x1xf32> to vector<8x32xf32>
    %343 = arith.subf %333, %342 : vector<8x32xf32>
    %344 = arith.mulf %343, %343 : vector<8x32xf32>
    %cst_159 = arith.constant dense<0.000000e+00> : vector<8xf32>
    %345 = vector.multi_reduction <add>, %344, %cst_159 [1] : vector<8x32xf32> to vector<8xf32>
    %346 = vector.shape_cast %345 : vector<8xf32> to vector<8x1xf32>
    %cst_160 = arith.constant 3.200000e+01 : f32
    %347 = vector.broadcast %cst_160 : f32 to vector<8x1xf32>
    %348 = arith.divf %346, %347 : vector<8x1xf32>
    %cst_161 = arith.constant 9.99999996E-13 : f32
    %349 = vector.broadcast %cst_161 : f32 to vector<8x1xf32>
    %350 = arith.addf %348, %349 : vector<8x1xf32>
    %351 = math.rsqrt %350 : vector<8x1xf32>
    %352 = vector.broadcast %351 : vector<8x1xf32> to vector<8x32xf32>
    %353 = arith.mulf %343, %352 : vector<8x32xf32>
    %354 = vector.broadcast %335 : vector<1x32xf32> to vector<8x32xf32>
    %355 = arith.mulf %353, %354 : vector<8x32xf32>
    %356 = vector.broadcast %337 : vector<1x32xf32> to vector<8x32xf32>
    %357 = arith.addf %355, %356 : vector<8x32xf32>
    %c0_162 = arith.constant 0 : index
    %c0_163 = arith.constant 0 : index
    %c0_164 = arith.constant 0 : index
    %358 = vector.load %arg17[%c0_162, %c0_163, %c0_164] : memref<1x8x32xf32, #tpu.memory_space<vmem>>, vector<1x8x32xf32>
    %359 = vector.shape_cast %358 : vector<1x8x32xf32> to vector<8x32xf32>
    %360 = vector.shape_cast %357 : vector<8x32xf32> to vector<1x8x32xf32>
    tpu.vector_store %arg17[%c0_162, %c0_163, %c0_164], %360 {strides = array<i32>} : memref<1x8x32xf32, #tpu.memory_space<vmem>>, vector<1x8x32xf32>,
    return
  }
  func.func @transform_0(%arg0: i32) -> (i32, i32, i32) {
    %c0_i32 = arith.constant 0 : i32
    %c0_i32_0 = arith.constant 0 : i32
    %c0_i32_1 = arith.constant 0 : i32
    return %arg0, %c0_i32, %c0_i32_0 : i32, i32, i32
  }
  func.func @transform_1(%arg0: i32) -> (i32, i32, i32) {
    %c0_i32 = arith.constant 0 : i32
    %c0_i32_0 = arith.constant 0 : i32
    %c0_i32_1 = arith.constant 0 : i32
    return %arg0, %c0_i32, %c0_i32_0 : i32, i32, i32
  }
  func.func @transform_2(%arg0: i32) -> (i32, i32) {
    %c0_i32 = arith.constant 0 : i32
    %c0_i32_0 = arith.constant 0 : i32
    %c0_i32_1 = arith.constant 0 : i32
    return %c0_i32, %c0_i32_0 : i32, i32
  }
  func.func @transform_3(%arg0: i32) -> (i32, i32) {
    %c0_i32 = arith.constant 0 : i32
    %c0_i32_0 = arith.constant 0 : i32
    %c0_i32_1 = arith.constant 0 : i32
    return %c0_i32, %c0_i32_0 : i32, i32
  }
  func.func @transform_4(%arg0: i32) -> (i32, i32, i32) {
    %c0_i32 = arith.constant 0 : i32
    %c0_i32_0 = arith.constant 0 : i32
    %c0_i32_1 = arith.constant 0 : i32
    %c0_i32_2 = arith.constant 0 : i32
    return %c0_i32, %c0_i32_0, %c0_i32_1 : i32, i32, i32
  }
  func.func @transform_5(%arg0: i32) -> (i32, i32, i32) {
    %c0_i32 = arith.constant 0 : i32
    %c0_i32_0 = arith.constant 0 : i32
    %c0_i32_1 = arith.constant 0 : i32
    %c0_i32_2 = arith.constant 0 : i32
    return %c0_i32, %c0_i32_0, %c0_i32_1 : i32, i32, i32
  }
  func.func @transform_6(%arg0: i32) -> (i32, i32, i32) {
    %c0_i32 = arith.constant 0 : i32
    %c0_i32_0 = arith.constant 0 : i32
    %c0_i32_1 = arith.constant 0 : i32
    %c0_i32_2 = arith.constant 0 : i32
    return %c0_i32, %c0_i32_0, %c0_i32_1 : i32, i32, i32
  }
  func.func @transform_7(%arg0: i32) -> (i32, i32, i32) {
    %c0_i32 = arith.constant 0 : i32
    %c0_i32_0 = arith.constant 0 : i32
    %c0_i32_1 = arith.constant 0 : i32
    %c0_i32_2 = arith.constant 0 : i32
    return %c0_i32, %c0_i32_0, %c0_i32_1 : i32, i32, i32
  }
  func.func @transform_8(%arg0: i32) -> (i32, i32, i32) {
    %c0_i32 = arith.constant 0 : i32
    %c0_i32_0 = arith.constant 0 : i32
    %c0_i32_1 = arith.constant 0 : i32
    %c0_i32_2 = arith.constant 0 : i32
    return %c0_i32, %c0_i32_0, %c0_i32_1 : i32, i32, i32
  }
  func.func @transform_9(%arg0: i32) -> (i32, i32, i32) {
    %c0_i32 = arith.constant 0 : i32
    %c0_i32_0 = arith.constant 0 : i32
    %c0_i32_1 = arith.constant 0 : i32
    %c0_i32_2 = arith.constant 0 : i32
    return %c0_i32, %c0_i32_0, %c0_i32_1 : i32, i32, i32
  }
  func.func @transform_10(%arg0: i32) -> (i32, i32, i32) {
    %c0_i32 = arith.constant 0 : i32
    %c0_i32_0 = arith.constant 0 : i32
    %c0_i32_1 = arith.constant 0 : i32
    %c0_i32_2 = arith.constant 0 : i32
    return %c0_i32, %c0_i32_0, %c0_i32_1 : i32, i32, i32
  }
  func.func @transform_11(%arg0: i32) -> (i32, i32, i32) {
    %c0_i32 = arith.constant 0 : i32
    %c0_i32_0 = arith.constant 0 : i32
    %c0_i32_1 = arith.constant 0 : i32
    %c0_i32_2 = arith.constant 0 : i32
    return %c0_i32, %c0_i32_0, %c0_i32_1 : i32, i32, i32
  }
  func.func @transform_12(%arg0: i32) -> (i32, i32, i32) {
    %c0_i32 = arith.constant 0 : i32
    %c0_i32_0 = arith.constant 0 : i32
    %c0_i32_1 = arith.constant 0 : i32
    %c0_i32_2 = arith.constant 0 : i32
    return %c0_i32, %c0_i32_0, %c0_i32_1 : i32, i32, i32
  }
  func.func @transform_13(%arg0: i32) -> (i32, i32, i32) {
    %c0_i32 = arith.constant 0 : i32
    %c0_i32_0 = arith.constant 0 : i32
    %c0_i32_1 = arith.constant 0 : i32
    %c0_i32_2 = arith.constant 0 : i32
    return %c0_i32, %c0_i32_0, %c0_i32_1 : i32, i32, i32
  }
  func.func @transform_14(%arg0: i32) -> (i32, i32, i32) {
    %c0_i32 = arith.constant 0 : i32
    %c0_i32_0 = arith.constant 0 : i32
    %c0_i32_1 = arith.constant 0 : i32
    %c0_i32_2 = arith.constant 0 : i32
    return %c0_i32, %c0_i32_0, %c0_i32_1 : i32, i32, i32
  }
  func.func @transform_15(%arg0: i32) -> (i32, i32, i32) {
    %c0_i32 = arith.constant 0 : i32
    %c0_i32_0 = arith.constant 0 : i32
    %c0_i32_1 = arith.constant 0 : i32
    %c0_i32_2 = arith.constant 0 : i32
    return %c0_i32, %c0_i32_0, %c0_i32_1 : i32, i32, i32
  }
  func.func @transform_16(%arg0: i32) -> (i32, i32, i32) {
    %c0_i32 = arith.constant 0 : i32
    %c0_i32_0 = arith.constant 0 : i32
    %c0_i32_1 = arith.constant 0 : i32
    return %arg0, %c0_i32, %c0_i32_0 : i32, i32, i32
  }
}

</mosaic_0001>

<bundles_post_ra>
// kernel: language_model_forward.1
= control target key start
LH: loop header
LB: loop body
LE: loop exit
PB: predicated region body
PF: predicated region fallthrough
CT: control target
= control target key end

     0   :  { %s4038_s0 = inlined_call_operand.vmem [shape: f32[2,8,32], index: 0, kind: input, shape index: {}]   ;;  %s4039_s1 = inlined_call_operand.vmem [shape: f32[2,1,8], index: 1, kind: input, shape index: {}]   ;;  %s4040_s2 = inlined_call_operand.vmem [shape: f32[1,32], index: 2, kind: input, shape index: {}]   ;;  %s4041_s3 = inlined_call_operand.vmem [shape: f32[1,32], index: 3, kind: input, shape index: {}]   ;;  %s4042_s4 = inlined_call_operand.vmem [shape: f32[2,32,96], index: 4, kind: input, shape index: {}]   ;;  %s4043_s5 = inlined_call_operand.vmem [shape: f32[2,1,96], index: 5, kind: input, shape index: {}]   ;;  %s4044_s6 = inlined_call_operand.vmem [shape: f32[2,32,32], index: 6, kind: input, shape index: {}]   ;;  %s4045_s7 = inlined_call_operand.vmem [shape: f32[2,1,32], index: 7, kind: input, shape index: {}]   ;;  %s4046_s8 = inlined_call_operand.vmem [shape: f32[2,1,32], index: 8, kind: input, shape index: {}]   ;;  %s4047_s9 = inlined_call_operand.vmem [shape: f32[2,1,32], index: 9, kind: input, shape index: {}]   ;;  %s4048_s10 = inlined_call_operand.vmem [shape: f32[2,32,64], index: 10, kind: input, shape index: {}]   ;;  %s4049_s11 = inlined_call_operand.vmem [shape: f32[2,1,64], index: 11, kind: input, shape index: {}]   ;;  %s4050_s12 = inlined_call_operand.vmem [shape: f32[2,64,32], index: 12, kind: input, shape index: {}]   ;;  %s4051_s13 = inlined_call_operand.vmem [shape: f32[2,1,32], index: 13, kind: input, shape index: {}]   ;;  %s4052_s14 = inlined_call_operand.vmem [shape: f32[2,1,32], index: 14, kind: input, shape index: {}]   ;;  %s4053_s15 = inlined_call_operand.vmem [shape: f32[2,1,32], index: 15, kind: input, shape index: {}]   ;;  %s4054_s16 = inlined_call_operand.hbm [shape: f32[2,8,32], index: 16, kind: output, shape index: {}]  }
   0x1   :  { %4072 = sst [smem:[#allocation9_spill]] %s4038_s0 }
   0x2   :  { %4073 = sst [smem:[#allocation10_spill]] %s4039_s1 }
   0x3   :  { %4074 = sst [smem:[#allocation11_spill]] %s4040_s2 }
   0x4   :  { %21 = vsyncpa [#allocation3], 0 }
   0x5   :  { %23 = vsyncpa [#allocation3 + $0x1], 0  ;;  %s3534_s21 = smov 0   ;;  %s3536_s22 = smov 0  }
   0x6   :  { %s3538_s23 = smov 0   ;;  %s3540_s24 = smov 0  }
   0x7 LB: > { %4075 = sst [smem:[#allocation5_spill]] %s3425_s23  ;;  %s3555_s25 = sadd.s32 4294967295, %s3429_s24   ;;  %s3429_s24 = sphi %s3540_s24, %s4098_s24   ;;  %s3425_s23 = sphi %s3538_s23, %s4100_s23   ;;  %s3421_s22 = sphi %s3536_s22, %s4102_s22   ;;  %s3417_s21 = sphi %s3534_s21, %s4101_s21  }
   0x8   : > { %s2853_s26 = sadd.s32 4294967294, %s3429_s24   ;;  %s3559_s27 = sadd.s32 1, %s3429_s24  }
   0x9   : > { %4076 = sst [smem:[#allocation6_spill]] %s3559_s27  ;;  %s382_s28 = sadd.s32 1, %s3425_s23 }
   0xa   : > { %s379_s29 = ssub.s32 %s3429_s24, %s3559_s27  ;;  %p392_p0 = scmp.ne.s32.totalorder %s3425_s23, %s3421_s22 }
   0xb   : > { %p380_p1 = scmp.eq.s32.totalorder %s379_s29, 0  ;;  %p393_p2 = scmp.eq.s32.totalorder %s3555_s25, 1 }
   0xc   : > { %p398_p3 = scmp.ne.s32.totalorder %s3421_s22, %s3417_s21  ;;  %p399_p4 = scmp.eq.s32.totalorder %s2853_s26, 1 }
   0xd   : > { %s3570_s30 = scalar_select %p380_p1, %s3425_s23, %s382_s28  }
   0xe   : > { %p3572_p5 = por %p393_p2, %p392_p0  ;;  %p3576_p6 = por %p399_p4, %p398_p3 }
   0xf   : > { %4077 = sst [smem:[#allocation7_spill]] %s3570_s30  ;;  %p2856_p7 = scmp.ge.s32.totalorder %s3429_s24, 1 }
  0x10   : > { %s4079_s17 = scalar_select %p3576_p6, 1, 0 }
  0x11   : > { %p472_p8 = scmp.lt.s32.totalorder %s3429_s24, 3 }
  0x12   : > { %4080 = sst [smem:[#allocation8_spill]] %s4079_s17 }
  0x13   : > { %p473_p9 = pnand %p2856_p7, %p472_p8 }
  0x14   : > { %p524_p10 = scmp.lt.s32.totalorder (!%p473_p9), %s3555_s25, 1  ;;  %vm534_vm0 = vcmask (!%p473_p9), 261120   ;;  %s4081_s28 = sld [smem:[#allocation9_spill]] (!%p473_p9)  ;;  %v566_v7 = vld [vmem:[%s4042_s4] sm:$0xff] (!%p473_p9)  ;;  %v567_v8 = vld [vmem:[%s4042_s4 + $0x8] sm:$0xff] (!%p473_p9)  ;;  %v568_v9 = vld [vmem:[%s4042_s4 + $0x10] sm:$0xff] (!%p473_p9)  ;;  %v730_v35 = vlaneseq (!%p473_p9) }
  0x15   : > { %476 = sbr.rel (%p473_p9) target bundleno = 5363 (0x14f3), region = 84  ;;  %v3431_v10 = vmov (!%p473_p9), 0.0|0.0   ;;  %v3206_v11 = vpack.c.bf16 (!%p473_p9), %v567_v8, %v566_v7  ;;  %v569_v12 = vld [vmem:[%s4042_s4 + $0x18] sm:$0xff] (!%p473_p9)  ;;  %vm3432_vm1 = vmmov (!%p473_p9), 0   ;;  %v3433_v13 = vmov (!%p473_p9), 0.0   ;;  %s4082_s2 = sld [smem:[#allocation11_spill]] (!%p473_p9) }
  0x16   : > { %3205 = vmatprep.subr.bf16.mxu1 (!%p473_p9), %v3431_v10  ;;  %3029 = vmatprep.mubr.msk.f32.mxu1 (!%p473_p9), %vm3432_vm1, %v3433_v13  ;;  %v3209_v14 = vpack.c.bf16 (!%p473_p9), %v569_v12, %v568_v9  ;;  %v2860_v21 = vld [vmem:[%s4041_s3] ss:$0 sm:$0xff] (!%p473_p9)  ;;  %s4067_s20 = smov (!%p473_p9), 120   ;;  %s4071_s26 = smov (!%p473_p9), 96   ;;  %vm653_vm2 = vcmask (!%p473_p9), 64512   ;;  %v731_v38 = vshrl.u32 (!%p473_p9), %v730_v35, 7 }
  0x17   : > { %3042 = vmatprep.subr.mxu0 (!%p473_p9), %v3433_v13  ;;  %3044 = vmatprep.mubr.msk.f32.mxu0 (!%p473_p9), %vm3432_vm1, %v3433_v13  ;;  %v2861_v24 = vld [vmem:[%s4043_s5] ss:$0 sm:$0xff] (!%p473_p9)  ;;  %s4066_s23 = smov (!%p473_p9), 80   ;;  %s4065_s27 = smov (!%p473_p9), 112   ;;  %vm1337_vm3 = vcmask (!%p473_p9), 130048   ;;  %vm1339_vm4 = vcmask (!%p473_p9), 195584  }
  0x18   : > { %3207 = vmatpush3.bf16.msra.mxu1 (!%p473_p9), %v3206_v11  ;;  %s4064_s30 = smov (!%p473_p9), 72   ;;  %s4059_s17 = smov (!%p473_p9), 104   ;;  %v732_v40 = vsub.s32 (!%p473_p9), 0, %v731_v38  ;;  %v1342_v38 = vld [vmem:[%s4044_s6 + $0x8] sm:$0xff] (!%p473_p9)  ;;  %vm1563_vm5 = vcmask (!%p473_p9), 523264  }
  0x19   : > { %3208 = vmatprep.subr.bf16.mxu1 (!%p473_p9), %v3431_v10  ;;  %s4083_s1 = sld [smem:[#allocation10_spill]] (!%p473_p9) }
  0x1b   : > { %v2859_v19 = vld [vmem:[%s4082_s2] ss:$0 sm:$0xff] (!%p473_p9) }
  0x1c   : > { %s3584_s18 = scalar_select %p524_p10, %s3555_s25, 1  ;;  %3210 = vmatpush3.bf16.msra.mxu1 %v3209_v14 }
  0x1d   : > { %3032 = vmatprep.subr.mxu1 %v3433_v13 }
  0x1e   : > { %s2858_s19 = sshll.u32 %s3584_s18, 3 }
  0x1f   : > { %s527_s29 = scalar_lea.vmem %s4081_s28, %s2858_s19  ;;  %s3436_s28 = smov 88  }
  0x20   : > { %v531_v0 = vld [vmem:[%s527_s29] sm:$0xff]  ;;  %s4061_s29 = smov 40   ;;  %s4060_s19 = smov 56  }
  0x21   : > { %v535_v1 = vsel %vm534_vm0, %v531_v0, 0.0 }
  0x22   : > { %536 = vadd.xlane.f32.xlu0 %v535_v1 }
  0xaf   : > { %v537_v2 = vpop.xlane.xlu0 %536 }
  0xb0   : > { %v539_v3 = vmul.f32 0.03125, %v537_v2 }
  0xb2   : > { %v540_v4 = vsub.f32 %v531_v0, %v539_v3 }
  0xb4   : > { %v541_v5 = vmul.f32 %v540_v4, %v540_v4 }
  0xb6   : > { %v542_v6 = vsel %vm534_vm0, %v541_v5, 0.0 }
  0xb7   : > { %543 = vadd.xlane.f32.xlu0 %v542_v6 }
 0x144   : > { %v544_v15 = vpop.xlane.xlu0 %543 }
 0x145   : > { %v545_v16 = vmul.f32 0.03125, %v544_v15 }
 0x147   : > { %v546_v17 = vadd.f32 1e-12, %v545_v16 }
 0x149   : > { %3321 = vrsqrt.f32 %v546_v17 }
 0x153   : > { %v3322_v18 = vpop.eup %3321 }
 0x154   : > { %v548_v20 = vmul.f32 %v3322_v18, %v540_v4 }
 0x156   : > { %v555_v22 = vmul.f32 %v2859_v19, %v548_v20 }
 0x158   : > { %v3618_v23 = vadd.f32 %v2860_v21, %v555_v22 }
 0x15a   : > { %3030 = vmatmul.mubr.msk.f32.vlgmr.msra.gmra.mrb[0].mxu1 %vm534_vm0, %v3618_v23 }
 0x15b   : > { %3034 = vmatprep.mubr.msk.f32.mxu1 %vm3432_vm1, %v3433_v13 }
 0x22d   : > { %v646_v25 = vpop.f32.mrb[0].mxu1 }
 0x22e   : > { %v3627_v26 = vadd.f32 %v2861_v24, %v646_v25  ;;  %v3031_v27 = vpop.f32.mrb[1].mxu1 }
 0x230   : > { %823 = vrot.lane.b32.xlu0 %v3627_v26, %s4067_s20  ;;  %651 = vrot.lane.b32.xlu1 %v3627_v26, %s4071_s26  ;;  %s4084_s26 = smov 96   ;;  %s4088_s20 = smov 72  }
 0x234   : > { %825 = vrot.lane.b32.xlu1 %v3627_v26, %s3436_s28 }
 0x238   : > { %992 = vrot.lane.b32.xlu1 %v3627_v26, %s4066_s23  ;;  %s4089_s23 = smov 104  }
 0x23c   : > { %990 = vrot.lane.b32.xlu1 %v3627_v26, %s4065_s27  ;;  %s4068_s27 = smov 24  }
 0x240   : > { %1159 = vrot.lane.b32.xlu1 %v3627_v26, %s4064_s30  ;;  %s4091_s30 = smov 48  }
 0x244   : > { %1157 = vrot.lane.b32.xlu1 %v3627_v26, %s4059_s17  ;;  %s530_s17 = scalar_lea.vmem %s4083_s1, %s3584_s18  ;;  %s4063_s18 = smov 64  }
 0x245   : > { %v563_v36 = vld [vmem:[%s530_s17] sm:$0x1]  ;;  %s4062_s17 = smov 48  }
 0x246   : > { %v564_v37 = vsub.f32 1.0, %v563_v36 }
 0x248   : > { %v565_v39 = vmul.f32 -1e+09, %v564_v37  ;;  %v1341_v37 = vld [vmem:[%s4044_s6] sm:$0xff] }
 0x24a   : > { %v3668_v41 = vrot.slane %v565_v39, %v732_v40  ;;  %v3212_v39 = vpack.c.bf16 %v1342_v38, %v1341_v37 }
 0x2a2   : > { %v652_v28 = vpop.permute.xlu1 %651  ;;  %v824_v30 = vpop.permute.xlu0 %823 }
 0x2a3   : > { %3033 = vmatpush3.xpose.msk.msra.mxu1 %vm653_vm2, %v652_v28 }
 0x2a4   : > { %3037 = vmatprep.subr.mxu1 %v3433_v13 }
 0x2a6   : > { %3035 = vmatmul.mubr.msk.f32.vlgmr.msra.gmra.mrb[2].mxu1 %vm653_vm2, %v3627_v26  ;;  %v826_v29 = vpop.permute.xlu1 %825 }
 0x2a7   : > { %3043 = vmatpush3.xpose.msk.msra.mxu0 %vm653_vm2, %v826_v29  ;;  %3039 = vmatprep.mubr.msk.f32.mxu1 %vm3432_vm1, %v3433_v13 }
 0x2a8   : > { %3052 = vmatprep.subr.mxu0 %v3433_v13 }
 0x2aa   : > { %3045 = vmatmul.mubr.msk.f32.vlgmr.msra.gmra.mrb[0].mxu0 %vm653_vm2, %v824_v30  ;;  %v993_v31 = vpop.permute.xlu1 %992 }
 0x2ab   : > { %3053 = vmatpush3.xpose.msk.msra.mxu0 %vm653_vm2, %v993_v31  ;;  %3054 = vmatprep.mubr.msk.f32.mxu0 %vm3432_vm1, %v3433_v13 }
 0x2ac   : > { %3062 = vmatprep.subr.mxu0 %v3433_v13 }
 0x2ae   : > { %v991_v32 = vpop.permute.xlu1 %990 }
 0x2af   : > { %3055 = vmatmul.mubr.msk.f32.vlgmr.msra.gmra.mrb[2].mxu0 %vm653_vm2, %v991_v32 }
 0x2b0   : > { %3064 = vmatprep.mubr.msk.f32.mxu0 %vm3432_vm1, %v3433_v13 }
 0x2b2   : > { %v1160_v33 = vpop.permute.xlu1 %1159 }
 0x2b3   : > { %3063 = vmatpush3.xpose.msk.msra.mxu0 %vm653_vm2, %v1160_v33 }
 0x2b4   : > { %3211 = vmatprep.subr.bf16.mxu0 %v3431_v10 }
 0x2b6   : > { %v1158_v34 = vpop.permute.xlu1 %1157 }
 0x2b7   : > { %3065 = vmatmul.mubr.msk.f32.vlgmr.msra.gmra.mrb[4].mxu0 %vm653_vm2, %v1158_v34 }
 0x2b8   : > { %3080 = vmatprep.mubr.msk.f32.mxu0 %vm3432_vm1, %v3433_v13  ;;  %3213 = vmatpush3.bf16.msra.mxu0 %v3212_v39 }
 0x2b9   : > { %3214 = vmatprep.subr.bf16.mxu0 %v3431_v10 }
 0x379   : > { %v724_v42 = vpop.f32.mrb[2].mxu1 }
 0x37a   : > { %v728_v43 = vmul.f32 0.35355338, %v724_v42  ;;  %v3036_v44 = vpop.f32.mrb[3].mxu1 }
 0x37b   : > { %v1344_v44 = vld [vmem:[%s4044_s6 + $0x18] sm:$0xff] }
 0x37c   : > { %v735_v45 = vadd.f32 %v3668_v41, %v728_v43  ;;  %v1343_v43 = vld [vmem:[%s4044_s6 + $0x10] sm:$0xff] }
 0x37d   : > { %v897_v46 = vpop.f32.mrb[0].mxu0 }
 0x37e   : > { %v901_v47 = vmul.f32 0.35355338, %v897_v46  ;;  %v3046_v48 = vpop.f32.mrb[1].mxu0  ;;  %v736_v49 = vsel %vm653_vm2, %v735_v45, -inf }
 0x37f   : > { %737 = vmax.xlane.f32.xlu1 %v736_v49 }
 0x380   : > { %v902_v50 = vadd.f32 %v901_v47, %v3668_v41 }
 0x382   : > { %v1064_v51 = vpop.f32.mrb[2].mxu0  ;;  %v903_v52 = vsel %vm653_vm2, %v902_v50, -inf }
 0x383   : > { %v1068_v53 = vmul.f32 0.35355338, %v1064_v51  ;;  %904 = vmax.xlane.f32.xlu0 %v903_v52  ;;  %v3056_v54 = vpop.f32.mrb[3].mxu0 }
 0x385   : > { %v1069_v55 = vadd.f32 %v1068_v53, %v3668_v41 }
 0x387   : > { %v1070_v56 = vsel %vm653_vm2, %v1069_v55, -inf }
 0x388   : > { %1071 = vmax.xlane.f32.xlu1 %v1070_v56 }
 0x38a   : > { %v1231_v57 = vpop.f32.mrb[4].mxu0 }
 0x38b   : > { %v1235_v58 = vmul.f32 0.35355338, %v1231_v57  ;;  %v3066_v59 = vpop.f32.mrb[5].mxu0 }
 0x38d   : > { %v1236_v60 = vadd.f32 %v1235_v58, %v3668_v41  ;;  %v2875_v58 = vld [vmem:[%s4045_s7] ss:$0 sm:$0xff] }
 0x38f   : > { %v1237_v61 = vsel %vm653_vm2, %v1236_v60, -inf }
 0x390   : > { %1238 = vmax.xlane.f32.xlu0 %v1237_v61 }
 0x399   : > { %747 = vrot.lane.b32.xlu1 %v3627_v26, %s4063_s18  ;;  %s4070_s18 = smov 8  }
 0x40c   : > { %v738_v62 = vpop.xlane.xlu1 %737 }
 0x40d   : > { %v739_v63 = vsub.f32 %v735_v45, %v738_v62  ;;  %v3215_v45 = vpack.c.bf16 %v1344_v44, %v1343_v43 }
 0x40f   : > { %v740_v0 = vmul.f32 1.442695, %v739_v63  ;;  %3216 = vmatpush3.bf16.msra.mxu0 %v3215_v45 }
 0x410   : > { %v905_v1 = vpop.xlane.xlu0 %904  ;;  %3223 = vmatprep.subr.bf16.mxu0 %v3431_v10 }
 0x411   : > { %3323 = vpow2.f32 %v740_v0  ;;  %v906_v2 = vsub.f32 %v902_v50, %v905_v1 }
 0x413   : > { %v907_v3 = vmul.f32 1.442695, %v906_v2 }
 0x415   : > { %3325 = vpow2.f32 %v907_v3  ;;  %v1072_v4 = vpop.xlane.xlu1 %1071 }
 0x416   : > { %v1073_v5 = vsub.f32 %v1069_v55, %v1072_v4 }
 0x418   : > { %v1074_v6 = vmul.f32 1.442695, %v1073_v5  ;;  %v1455_v5 = vld [vmem:[%s4048_s10] sm:$0xff] }
 0x419   : > { %v748_v7 = vpop.permute.xlu1 %747 }
 0x41a   : > { %3327 = vpow2.f32 %v1074_v6  ;;  %3038 = vmatpush3.msra.mxu1 %v748_v7  ;;  %v1456_v6 = vld [vmem:[%s4048_s10 + $0x8] sm:$0xff] }
 0x41b   : > { %v3324_v8 = vpop.eup %3323  ;;  %3047 = vmatprep.subr.mxu1 %v3433_v13  ;;  %v3218_v7 = vpack.c.bf16 %v1456_v6, %v1455_v5  ;;  %v2883_v5 = vld [vmem:[%s4052_s14] ss:$0 sm:$0xff] }
 0x41c   : > { %v742_v9 = vsel %vm653_vm2, %v3324_v8, 0.0 }
 0x41d   : > { %v1239_v11 = vpop.xlane.xlu0 %1238  ;;  %743 = vadd.xlane.f32.xlu1 %v742_v9 }
 0x41e   : > { %v1240_v12 = vsub.f32 %v1236_v60, %v1239_v11 }
 0x41f   : > { %v3326_v14 = vpop.eup %3325 }
 0x420   : > { %v1241_v15 = vmul.f32 1.442695, %v1240_v12  ;;  %v909_v16 = vsel %vm653_vm2, %v3326_v14, 0.0 }
 0x421   : > { %910 = vadd.xlane.f32.xlu0 %v909_v16  ;;  %v2877_v16 = vld [vmem:[%s4046_s8] ss:$0 sm:$0xff] }
 0x422   : > { %3329 = vpow2.f32 %v1241_v15 }
 0x424   : > { %v3328_v17 = vpop.eup %3327 }
 0x425   : > { %v1076_v18 = vsel %vm653_vm2, %v3328_v17, 0.0 }
 0x426   : > { %1077 = vadd.xlane.f32.xlu1 %v1076_v18  ;;  %v2878_v18 = vld [vmem:[%s4047_s9] ss:$0 sm:$0xff] }
 0x42c   : > { %v3330_v19 = vpop.eup %3329 }
 0x42d   : > { %v1243_v20 = vsel %vm653_vm2, %v3330_v19, 0.0 }
 0x42e   : > { %1244 = vadd.xlane.f32.xlu0 %v1243_v20 }
 0x437   : > { %1081 = vrot.lane.b32.xlu1 %v3627_v26, %s4062_s17  ;;  %s4069_s17 = smov 16  }
 0x43b   : > { %1248 = vrot.lane.b32.xlu1 %v3627_v26, %s4061_s29  ;;  %s4092_s29 = smov 40  }
 0x444   : > { %914 = vrot.lane.b32.xlu0 %v3627_v26, %s4060_s19  ;;  %s4085_s19 = smov 120  }
 0x4aa   : > { %v744_v21 = vpop.xlane.xlu1 %743 }
 0x4ab   : > { %3331 = vrcp.f32 %v744_v21  ;;  %v1548_v21 = vld [vmem:[%s4050_s12] sm:$0xff] }
 0x4ae   : > { %v911_v22 = vpop.xlane.xlu0 %910 }
 0x4af   : > { %3333 = vrcp.f32 %v911_v22  ;;  %v1549_v22 = vld [vmem:[%s4050_s12 + $0x8] sm:$0xff] }
 0x4b3   : > { %v1078_v24 = vpop.xlane.xlu1 %1077 }
 0x4b4   : > { %3335 = vrcp.f32 %v1078_v24  ;;  %v3224_v24 = vpack.c.bf16 %v1549_v22, %v1548_v21 }
 0x4b5   : > { %v3332_v25 = vpop.eup %3331 }
 0x4b6   : > { %v746_v27 = vmul.f32 %v3332_v25, %v3324_v8  ;;  %v1458_v8 = vld [vmem:[%s4048_s10 + $0x18] sm:$0xff]  ;;  %v1550_v25 = vld [vmem:[%s4050_s12 + $0x10] sm:$0xff] }
 0x4b7   : > { %v1082_v31 = vpop.permute.xlu1 %1081 }
 0x4b8   : > { %3040 = vmatmul.mubr.msk.f32.vlgmr.msra.gmra.mrb[4].mxu1 %vm653_vm2, %v746_v27  ;;  %v1551_v27 = vld [vmem:[%s4050_s12 + $0x18] sm:$0xff] }
 0x4b9   : > { %3049 = vmatprep.mubr.msk.f32.mxu1 %vm3432_vm1, %v3433_v13  ;;  %v3334_v29 = vpop.eup %3333 }
 0x4ba   : > { %v913_v30 = vmul.f32 %v3334_v29, %v3326_v14  ;;  %v1552_v29 = vld [vmem:[%s4050_s12 + $0x20] sm:$0xff] }
 0x4bb   : > { %v1245_v28 = vpop.xlane.xlu0 %1244  ;;  %v1249_v34 = vpop.permute.xlu1 %1248 }
 0x4bc   : > { %3337 = vrcp.f32 %v1245_v28  ;;  %v3227_v28 = vpack.c.bf16 %v1551_v27, %v1550_v25 }
 0x4be   : > { %v3336_v26 = vpop.eup %3335 }
 0x4bf   : > { %v915_v32 = vpop.permute.xlu0 %914  ;;  %v1080_v33 = vmul.f32 %v3336_v26, %v3328_v17  ;;  %v1555_v26 = vld [vmem:[%s4050_s12 + $0x38] sm:$0xff] }
 0x4c0   : > { %3048 = vmatpush3.msra.mxu1 %v915_v32  ;;  %v1554_v32 = vld [vmem:[%s4050_s12 + $0x30] sm:$0xff] }
 0x4c1   : > { %3050 = vmatmul.mubr.msk.f32.vlgmr.msra.gmra.mrb[6].mxu1 %vm653_vm2, %v913_v30  ;;  %3057 = vmatprep.subr.mxu1 %v3433_v13  ;;  %v1553_v30 = vld [vmem:[%s4050_s12 + $0x28] sm:$0xff] }
 0x4c2   : > { %3058 = vmatpush3.msra.mxu1 %v1082_v31  ;;  %3059 = vmatprep.mubr.msk.f32.mxu1 %vm3432_vm1, %v3433_v13  ;;  %v3230_v31 = vpack.c.bf16 %v1553_v30, %v1552_v29 }
 0x4c3   : > { %3067 = vmatprep.subr.mxu1 %v3433_v13 }
 0x4c5   : > { %3060 = vmatmul.mubr.msk.f32.vlgmr.msra.gmra.mrb[8].mxu1 %vm653_vm2, %v1080_v33  ;;  %v3233_v33 = vpack.c.bf16 %v1555_v26, %v1554_v32 }
 0x4c6   : > { %v3338_v35 = vpop.eup %3337  ;;  %3068 = vmatpush3.msra.mxu1 %v1249_v34  ;;  %3069 = vmatprep.mubr.msk.f32.mxu1 %vm3432_vm1, %v3433_v13  ;;  %v2879_v34 = vld [vmem:[%s4049_s11] ss:$0 sm:$0xff] }
 0x4c7   : > { %v1247_v36 = vmul.f32 %v3338_v35, %v3330_v19  ;;  %3217 = vmatprep.subr.bf16.mxu1 %v3431_v10 }
 0x4c9   : > { %3070 = vmatmul.mubr.msk.f32.vlgmr.msra.gmra.mrb[10].mxu1 %vm653_vm2, %v1247_v36 }
 0x4ca   : > { %3091 = vmatprep.mubr.msk.f32.mxu1 %vm3432_vm1, %v3433_v13  ;;  %3219 = vmatpush3.bf16.msra.mxu1 %v3218_v7  ;;  %v2884_v7 = vld [vmem:[%s4053_s15] ss:$0 sm:$0xff] }
 0x4cb   : > { %3220 = vmatprep.subr.bf16.mxu1 %v3431_v10 }
 0x58b   : > { %v819_v40 = vpop.f32.mrb[4].mxu1 }
 0x58c   : > { %v3041_v42 = vpop.f32.mrb[5].mxu1 }
 0x594   : > { %v986_v46 = vpop.f32.mrb[6].mxu1 }
 0x595   : > { %1325 = vrot.lane.b32.xlu0 %v986_v46, %s4070_s18  ;;  %v3051_v47 = vpop.f32.mrb[7].mxu1  ;;  %s4086_s18 = smov 80  }
 0x598   : > { %v1153_v48 = vpop.f32.mrb[8].mxu1 }
 0x599   : > { %1329 = vrot.lane.b32.xlu1 %v1153_v48, %s4069_s17  ;;  %v3061_v49 = vpop.f32.mrb[9].mxu1  ;;  %v2881_v48 = vld [vmem:[%s4051_s13] ss:$0 sm:$0xff]  ;;  %s4087_s17 = smov 112  }
 0x59c   : > { %v1320_v50 = vpop.f32.mrb[10].mxu1 }
 0x59d   : > { %1333 = vrot.lane.b32.xlu0 %v1320_v50, %s4068_s27  ;;  %v3071_v51 = vpop.f32.mrb[11].mxu1  ;;  %s4093_s27 = smov 56  }
 0x607   : > { %v1326_v52 = vpop.permute.xlu0 %1325 }
 0x608   : > { %v1336_v54 = vsel %vm653_vm2, %v819_v40, %v1326_v52 }
 0x60b   : > { %v1330_v53 = vpop.permute.xlu1 %1329 }
 0x60c   : > { %v1338_v55 = vsel %vm1337_vm3, %v1336_v54, %v1330_v53 }
 0x60f   : > { %v1334_v56 = vpop.permute.xlu0 %1333 }
 0x610   : > { %v1340_v57 = vsel %vm1339_vm4, %v1338_v55, %v1334_v56 }
 0x611   : > { %3081 = vmatmul.mubr.msk.f32.vlgmr.msra.gmra.mrb[6].mxu0 %vm534_vm0, %v1340_v57 }
 0x612   : > { %3110 = vmatprep.mubr.msk.f32.mxu0 %vm3432_vm1, %v3433_v13  ;;  %3225 = vmatpush3.bf16.msra.mxu0 %v3224_v24 }
 0x613   : > { %3226 = vmatprep.subr.bf16.mxu0 %v3431_v10 }
 0x616   : > { %3228 = vmatpush3.bf16.msra.mxu0 %v3227_v28 }
 0x617   : > { %3229 = vmatprep.subr.bf16.mxu0 %v3431_v10 }
 0x61a   : > { %3231 = vmatpush3.bf16.msra.mxu0 %v3230_v31 }
 0x61b   : > { %3232 = vmatprep.subr.bf16.mxu0 %v3431_v10 }
 0x61e   : > { %3234 = vmatpush3.bf16.msra.mxu0 %v3233_v33 }
 0x61f   : > { %3134 = vmatprep.subr.mxu0 %v3433_v13 }
 0x6e4   : > { %v1421_v59 = vpop.f32.mrb[6].mxu0 }
 0x6e5   : > { %v1422_v60 = vadd.f32 %v2875_v58, %v1421_v59  ;;  %v3082_v61 = vpop.f32.mrb[7].mxu0  ;;  %v2885_v59 = vld [vmem:[%s4042_s4 + $0x20] sm:$0xff] }
 0x6e7   : > { %v1425_v62 = vadd.f32 %v1422_v60, %v3618_v23  ;;  %v1457_v23 = vld [vmem:[%s4048_s10 + $0x10] sm:$0xff]  ;;  %v2886_v60 = vld [vmem:[%s4042_s4 + $0x28] sm:$0xff] }
 0x6e8   : > { %v3221_v9 = vpack.c.bf16 %v1458_v8, %v1457_v23  ;;  %v3236_v61 = vpack.c.bf16 %v2886_v60, %v2885_v59 }
 0x6e9   : > { %v1428_v63 = vsel %vm534_vm0, %v1425_v62, 0.0 }
 0x6ea   : > { %1429 = vadd.xlane.f32.xlu1 %v1428_v63  ;;  %3222 = vmatpush3.bf16.msra.mxu1 %v3221_v9  ;;  %v2888_v63 = vld [vmem:[%s4042_s4 + $0x38] sm:$0xff]  ;;  %v2890_v9 = vld [vmem:[%s4043_s5 + $0x1] ss:$0 sm:$0xff] }
 0x6eb   : > { %3235 = vmatprep.subr.bf16.mxu1 %v3431_v10 }
 0x777   : > { %v1430_v0 = vpop.xlane.xlu1 %1429 }
 0x778   : > { %v1431_v1 = vmul.f32 0.03125, %v1430_v0 }
 0x77a   : > { %v1432_v2 = vsub.f32 %v1425_v62, %v1431_v1  ;;  %v2887_v62 = vld [vmem:[%s4042_s4 + $0x30] sm:$0xff] }
 0x77b   : > { %v3239_v0 = vpack.c.bf16 %v2888_v63, %v2887_v62 }
 0x77c   : > { %v1433_v3 = vmul.f32 %v1432_v2, %v1432_v2 }
 0x77e   : > { %v1434_v4 = vsel %vm534_vm0, %v1433_v3, 0.0 }
 0x77f   : > { %1435 = vadd.xlane.f32.xlu0 %v1434_v4 }
 0x80c   : > { %v1436_v11 = vpop.xlane.xlu0 %1435 }
 0x80d   : > { %v1437_v12 = vmul.f32 0.03125, %v1436_v11 }
 0x80f   : > { %v1438_v14 = vadd.f32 1e-12, %v1437_v12 }
 0x811   : > { %3339 = vrsqrt.f32 %v1438_v14 }
 0x81b   : > { %v3340_v15 = vpop.eup %3339 }
 0x81c   : > { %v1440_v17 = vmul.f32 %v3340_v15, %v1432_v2 }
 0x81e   : > { %v1447_v19 = vmul.f32 %v2877_v16, %v1440_v17 }
 0x820   : > { %v1454_v20 = vadd.f32 %v2878_v18, %v1447_v19 }
 0x822   : > { %3092 = vmatmul.mubr.msk.f32.vlgmr.msra.gmra.mrb[12].mxu1 %vm534_vm0, %v1454_v20 }
 0x823   : > { %3121 = vmatprep.mubr.msk.f32.mxu1 %vm3432_vm1, %v3433_v13  ;;  %3237 = vmatpush3.bf16.msra.mxu1 %v3236_v61 }
 0x824   : > { %3238 = vmatprep.subr.bf16.mxu1 %v3431_v10 }
 0x827   : > { %3240 = vmatpush3.bf16.msra.mxu1 %v3239_v0 }
 0x828   : > { %3124 = vmatprep.subr.mxu1 %v3433_v13 }
 0x8f5   : > { %v1535_v35 = vpop.f32.mrb[12].mxu1 }
 0x8f6   : > { %v1536_v36 = vadd.f32 %v2879_v34, %v1535_v35  ;;  %v3093_v37 = vpop.f32.mrb[13].mxu1 }
 0x8f8   : > { %v1540_v38 = vmul.f32 0.044715, %v1536_v36  ;;  %v1539_v45 = vmul.f32 0.5, %v1536_v36 }
 0x8fa   : > { %v1541_v39 = vmul.f32 %v1540_v38, %v1536_v36 }
 0x8fc   : > { %v1542_v40 = vmul.f32 %v1541_v39, %v1536_v36 }
 0x8fe   : > { %v1543_v42 = vadd.f32 %v1542_v40, %v1536_v36 }
 0x900   : > { %v1544_v43 = vmul.f32 0.7978846, %v1543_v42 }
 0x902   : > { %3341 = vtanh.f32 %v1544_v43 }
 0x90c   : > { %v3342_v44 = vpop.eup %3341 }
 0x90d   : > { %v1546_v46 = vadd.f32 1.0, %v3342_v44 }
 0x90f   : > { %v1547_v47 = vmul.f32 %v1546_v46, %v1539_v45 }
 0x911   : > { %3111 = vmatmul.mubr.msk.f32.vlgmr.msra.gmra.mrb[8].mxu0 %vm1563_vm5, %v1547_v47 }
 0x912   : > { %3136 = vmatprep.mubr.msk.f32.mxu0 %vm3432_vm1, %v3433_v13 }
 0x9e4   : > { %v1633_v49 = vpop.f32.mrb[8].mxu0 }
 0x9e5   : > { %v1634_v50 = vadd.f32 %v2881_v48, %v1633_v49  ;;  %v3112_v51 = vpop.f32.mrb[9].mxu0 }
 0x9e7   : > { %v1637_v52 = vadd.f32 %v1634_v50, %v1454_v20 }
 0x9e9   : > { %v1640_v53 = vsel %vm534_vm0, %v1637_v52, 0.0 }
 0x9ea   : > { %1641 = vadd.xlane.f32.xlu0 %v1640_v53 }
 0xa77   : > { %v1642_v54 = vpop.xlane.xlu0 %1641 }
 0xa78   : > { %v1643_v55 = vmul.f32 0.03125, %v1642_v54 }
 0xa7a   : > { %v1644_v56 = vsub.f32 %v1637_v52, %v1643_v55 }
 0xa7c   : > { %v1645_v57 = vmul.f32 %v1644_v56, %v1644_v56 }
 0xa7e   : > { %v1646_v58 = vsel %vm534_vm0, %v1645_v57, 0.0 }
 0xa7f   : > { %1647 = vadd.xlane.f32.xlu1 %v1646_v58 }
 0xb0c   : > { %v1648_v1 = vpop.xlane.xlu1 %1647 }
 0xb0d   : > { %v1649_v2 = vmul.f32 0.03125, %v1648_v1 }
 0xb0f   : > { %v1650_v3 = vadd.f32 1e-12, %v1649_v2 }
 0xb11   : > { %3343 = vrsqrt.f32 %v1650_v3 }
 0xb1b   : > { %v3344_v4 = vpop.eup %3343 }
 0xb1c   : > { %v1652_v6 = vmul.f32 %v3344_v4, %v1644_v56 }
 0xb1e   : > { %v1659_v23 = vmul.f32 %v2883_v5, %v1652_v6 }
 0xb20   : > { %v3817_v8 = vadd.f32 %v2884_v7, %v1659_v23 }
 0xb22   : > { %3122 = vmatmul.mubr.msk.f32.vlgmr.msra.gmra.mrb[14].mxu1 %vm534_vm0, %v3817_v8 }
 0xb23   : > { %3126 = vmatprep.mubr.msk.f32.mxu1 %vm3432_vm1, %v3433_v13 }
 0xbf5   : > { %v1749_v11 = vpop.f32.mrb[14].mxu1 }
 0xbf6   : > { %v3826_v12 = vadd.f32 %v2890_v9, %v1749_v11  ;;  %v3123_v14 = vpop.f32.mrb[15].mxu1 }
 0xbf8   : > { %1921 = vrot.lane.b32.xlu1 %v3826_v12, %s3436_s28  ;;  %1754 = vrot.lane.b32.xlu0 %v3826_v12, %s4084_s26  ;;  %s4090_s28 = smov 64   ;;  %s4096_s26 = smov 24  }
 0xbfc   : > { %1919 = vrot.lane.b32.xlu1 %v3826_v12, %s4085_s19  ;;  %2088 = vrot.lane.b32.xlu0 %v3826_v12, %s4086_s18  ;;  %s2938_s19 = sshll.u32 %s3555_s25, 7  ;;  %s3448_s25 = smov [#allocation2]  }
 0xbfd   : > { %s3995_s2 = scalar_lea.hbm %s4054_s16, %s2938_s19 }
 0xc00   : > { %2086 = vrot.lane.b32.xlu1 %v3826_v12, %s4087_s17  ;;  %2255 = vrot.lane.b32.xlu0 %v3826_v12, %s4088_s20 }
 0xc04   : > { %2253 = vrot.lane.b32.xlu1 %v3826_v12, %s4089_s23  ;;  %s521_s23 = sand.u32 1, %s3421_s22  }
 0xc6a   : > { %v1922_v15 = vpop.permute.xlu1 %1921  ;;  %v1755_v16 = vpop.permute.xlu0 %1754 }
 0xc6b   : > { %3125 = vmatpush3.xpose.msk.msra.mxu1 %vm653_vm2, %v1755_v16  ;;  %3135 = vmatpush3.xpose.msk.msra.mxu0 %vm653_vm2, %v1922_v15 }
 0xc6c   : > { %3144 = vmatprep.subr.mxu0 %v3433_v13  ;;  %3129 = vmatprep.subr.mxu1 %v3433_v13 }
 0xc6e   : > { %v1920_v17 = vpop.permute.xlu1 %1919  ;;  %3127 = vmatmul.mubr.msk.f32.vlgmr.msra.gmra.mrb[16].mxu1 %vm653_vm2, %v3826_v12  ;;  %v2089_v18 = vpop.permute.xlu0 %2088 }
 0xc6f   : > { %3137 = vmatmul.mubr.msk.f32.vlgmr.msra.gmra.mrb[10].mxu0 %vm653_vm2, %v1920_v17  ;;  %3131 = vmatprep.mubr.msk.f32.mxu1 %vm3432_vm1, %v3433_v13  ;;  %v2904_v17 = vld [vmem:[%s4044_s6 + $0x20] sm:$0xff] }
 0xc70   : > { %3145 = vmatpush3.xpose.msk.msra.mxu0 %vm653_vm2, %v2089_v18  ;;  %3146 = vmatprep.mubr.msk.f32.mxu0 %vm3432_vm1, %v3433_v13  ;;  %v2905_v18 = vld [vmem:[%s4044_s6 + $0x28] sm:$0xff] }
 0xc71   : > { %3154 = vmatprep.subr.mxu0 %v3433_v13 }
 0xc72   : > { %v2087_v19 = vpop.permute.xlu1 %2086  ;;  %v2256_v20 = vpop.permute.xlu0 %2255 }
 0xc73   : > { %3147 = vmatmul.mubr.msk.f32.vlgmr.msra.gmra.mrb[12].mxu0 %vm653_vm2, %v2087_v19  ;;  %v3242_v19 = vpack.c.bf16 %v2905_v18, %v2904_v17 }
 0xc74   : > { %3155 = vmatpush3.xpose.msk.msra.mxu0 %vm653_vm2, %v2256_v20  ;;  %3156 = vmatprep.mubr.msk.f32.mxu0 %vm3432_vm1, %v3433_v13  ;;  %v2906_v20 = vld [vmem:[%s4044_s6 + $0x30] sm:$0xff] }
 0xc75   : > { %3241 = vmatprep.subr.bf16.mxu0 %v3431_v10 }
 0xc76   : > { %v2254_v21 = vpop.permute.xlu1 %2253 }
 0xc77   : > { %3157 = vmatmul.mubr.msk.f32.vlgmr.msra.gmra.mrb[14].mxu0 %vm653_vm2, %v2254_v21  ;;  %v2907_v21 = vld [vmem:[%s4044_s6 + $0x38] sm:$0xff] }
 0xc78   : > { %3172 = vmatprep.mubr.msk.f32.mxu0 %vm3432_vm1, %v3433_v13  ;;  %3243 = vmatpush3.bf16.msra.mxu0 %v3242_v19 }
 0xc79   : > { %3244 = vmatprep.subr.bf16.mxu0 %v3431_v10 }
 0xd41   : > { %v1826_v22 = vpop.f32.mrb[16].mxu1 }
 0xd42   : > { %v1830_v24 = vmul.f32 0.35355338, %v1826_v22  ;;  %v3128_v25 = vpop.f32.mrb[17].mxu1  ;;  %v1993_v27 = vpop.f32.mrb[10].mxu0  ;;  %v3245_v22 = vpack.c.bf16 %v2907_v21, %v2906_v20 }
 0xd43   : > { %v1997_v28 = vmul.f32 0.35355338, %v1993_v27  ;;  %v3138_v29 = vpop.f32.mrb[11].mxu0 }
 0xd44   : > { %v1831_v30 = vadd.f32 %v1830_v24, %v3668_v41  ;;  %3246 = vmatpush3.bf16.msra.mxu0 %v3245_v22 }
 0xd45   : > { %v1998_v31 = vadd.f32 %v1997_v28, %v3668_v41  ;;  %3253 = vmatprep.subr.bf16.mxu0 %v3431_v10 }
 0xd46   : > { %v2160_v32 = vpop.f32.mrb[12].mxu0  ;;  %v1832_v26 = vsel %vm653_vm2, %v1831_v30, -inf }
 0xd47   : > { %v2164_v33 = vmul.f32 0.35355338, %v2160_v32  ;;  %v3148_v34 = vpop.f32.mrb[13].mxu0  ;;  %1833 = vmax.xlane.f32.xlu0 %v1832_v26  ;;  %v1999_v35 = vsel %vm653_vm2, %v1998_v31, -inf }
 0xd48   : > { %2000 = vmax.xlane.f32.xlu1 %v1999_v35 }
 0xd49   : > { %v2165_v36 = vadd.f32 %v2164_v33, %v3668_v41 }
 0xd4a   : > { %v2327_v37 = vpop.f32.mrb[14].mxu0 }
 0xd4b   : > { %v2331_v38 = vmul.f32 0.35355338, %v2327_v37  ;;  %v3158_v39 = vpop.f32.mrb[15].mxu0  ;;  %v2166_v40 = vsel %vm653_vm2, %v2165_v36, -inf }
 0xd4c   : > { %2167 = vmax.xlane.f32.xlu0 %v2166_v40 }
 0xd4d   : > { %v2332_v42 = vadd.f32 %v2331_v38, %v3668_v41  ;;  %v2909_v38 = vld [vmem:[%s4045_s7 + $0x1] ss:$0 sm:$0xff] }
 0xd4f   : > { %v2333_v43 = vsel %vm653_vm2, %v2332_v42, -inf }
 0xd50   : > { %2334 = vmax.xlane.f32.xlu0 %v2333_v43 }
 0xd59   : > { %1843 = vrot.lane.b32.xlu1 %v3826_v12, %s4090_s28  ;;  %s2857_s28 = sshll.u32 %s521_s23, 3 }
 0xd5a   : > { %s523_s18 = scalar_lea.vmem [#allocation2], %s2857_s28  ;;  %s3371_s28 = sshll.u32 %s3448_s25, 4  ;;  %s3372_s28 = int_to_ptr.vmem [resolvable:$false] %s3371_s28 }
 0xd5b   : > { %s2785_s17 = sshll.u32 %s523_s18, 4  ;;  %s3997_s17 = int_to_ptr.vmem [resolvable:$true] %s2785_s17 }
 0xd5c   : > { %p3374_p0 = scmp.lt.s32.totalorder %s3997_s17, %s3372_s28 }
 0xdd4   : > { %v1834_v44 = vpop.xlane.xlu0 %1833 }
 0xdd5   : > { %v1835_v45 = vsub.f32 %v1831_v30, %v1834_v44  ;;  %v2001_v46 = vpop.xlane.xlu1 %2000 }
 0xdd6   : > { %v2002_v47 = vsub.f32 %v1998_v31, %v2001_v46 }
 0xdd7   : > { %v1836_v48 = vmul.f32 1.442695, %v1835_v45 }
 0xdd8   : > { %v2003_v49 = vmul.f32 1.442695, %v2002_v47 }
 0xdd9   : > { %3345 = vpow2.f32 %v1836_v48  ;;  %v1844_v50 = vpop.permute.xlu1 %1843  ;;  %v2168_v51 = vpop.xlane.xlu0 %2167 }
 0xdda   : > { %3347 = vpow2.f32 %v2003_v49  ;;  %v2169_v52 = vsub.f32 %v2165_v36, %v2168_v51  ;;  %3130 = vmatpush3.msra.mxu1 %v1844_v50  ;;  %v2916_v50 = vld [vmem:[%s4048_s10 + $0x28] sm:$0xff] }
 0xddb   : > { %3139 = vmatprep.subr.mxu1 %v3433_v13 }
 0xddc   : > { %v2170_v41 = vmul.f32 1.442695, %v2169_v52  ;;  %v2918_v52 = vld [vmem:[%s4048_s10 + $0x38] sm:$0xff] }
 0xddd   : > { %v2335_v53 = vpop.xlane.xlu0 %2334 }
 0xdde   : > { %3349 = vpow2.f32 %v2170_v41  ;;  %v2336_v54 = vsub.f32 %v2332_v42, %v2335_v53 }
 0xde0   : > { %v2337_v55 = vmul.f32 1.442695, %v2336_v54 }
 0xde2   : > { %3351 = vpow2.f32 %v2337_v55 }
 0xde3   : > { %v3346_v56 = vpop.eup %3345 }
 0xde4   : > { %v3348_v57 = vpop.eup %3347  ;;  %v1838_v58 = vsel %vm653_vm2, %v3346_v56, 0.0 }
 0xde5   : > { %1839 = vadd.xlane.f32.xlu1 %v1838_v58  ;;  %v2005_v59 = vsel %vm653_vm2, %v3348_v57, 0.0 }
 0xde6   : > { %2006 = vadd.xlane.f32.xlu0 %v2005_v59  ;;  %v2914_v59 = vld [vmem:[%s4047_s9 + $0x1] ss:$0 sm:$0xff] }
 0xde8   : > { %v3350_v60 = vpop.eup %3349 }
 0xde9   : > { %v2172_v61 = vsel %vm653_vm2, %v3350_v60, 0.0 }
 0xdea   : > { %2173 = vadd.xlane.f32.xlu1 %v2172_v61 }
 0xdec   : > { %v3352_v62 = vpop.eup %3351 }
 0xded   : > { %v2339_v63 = vsel %vm653_vm2, %v3352_v62, 0.0 }
 0xdee   : > { %2340 = vadd.xlane.f32.xlu0 %v2339_v63  ;;  %v2923_v63 = vld [vmem:[%s4050_s12 + $0x48] sm:$0xff] }
 0xdfb   : > { %2177 = vrot.lane.b32.xlu1 %v3826_v12, %s4091_s30  ;;  %s2772_s30 = scalar_lea.sflag [#allocation3], %s521_s23 }
 0xdff   : > { %2344 = vrot.lane.b32.xlu1 %v3826_v12, %s4092_s29  ;;  %s4094_s29 = smov 8  }
 0xe04   : > { %2010 = vrot.lane.b32.xlu0 %v3826_v12, %s4093_s27  ;;  %s4095_s27 = smov 16  }
 0xe72   : > { %v1840_v0 = vpop.xlane.xlu1 %1839 }
 0xe73   : > { %3353 = vrcp.f32 %v1840_v0  ;;  %v2007_v1 = vpop.xlane.xlu0 %2006 }
 0xe74   : > { %3355 = vrcp.f32 %v2007_v1  ;;  %v2924_v1 = vld [vmem:[%s4050_s12 + $0x50] sm:$0xff] }
 0xe77   : > { %v2174_v2 = vpop.xlane.xlu1 %2173 }
 0xe78   : > { %3357 = vrcp.f32 %v2174_v2  ;;  %v2925_v2 = vld [vmem:[%s4050_s12 + $0x58] sm:$0xff] }
 0xe7b   : > { %v2341_v3 = vpop.xlane.xlu0 %2340  ;;  %v2178_v9 = vpop.permute.xlu1 %2177 }
 0xe7c   : > { %3359 = vrcp.f32 %v2341_v3  ;;  %v3257_v3 = vpack.c.bf16 %v2925_v2, %v2924_v1 }
 0xe7d   : > { %v3354_v4 = vpop.eup %3353 }
 0xe7e   : > { %v1842_v5 = vmul.f32 %v3354_v4, %v3346_v56  ;;  %v3356_v6 = vpop.eup %3355  ;;  %v2926_v4 = vld [vmem:[%s4050_s12 + $0x60] sm:$0xff] }
 0xe7f   : > { %v2011_v7 = vpop.permute.xlu0 %2010  ;;  %v2009_v23 = vmul.f32 %v3356_v6, %v3348_v57  ;;  %v2345_v15 = vpop.permute.xlu1 %2344  ;;  %v2913_v57 = vld [vmem:[%s4046_s8 + $0x1] ss:$0 sm:$0xff] }
 0xe80   : > { %3132 = vmatmul.mubr.msk.f32.vlgmr.msra.gmra.mrb[18].mxu1 %vm653_vm2, %v1842_v5  ;;  %v2927_v5 = vld [vmem:[%s4050_s12 + $0x68] sm:$0xff] }
 0xe81   : > { %3140 = vmatpush3.msra.mxu1 %v2011_v7  ;;  %3141 = vmatprep.mubr.msk.f32.mxu1 %vm3432_vm1, %v3433_v13  ;;  %v3260_v6 = vpack.c.bf16 %v2927_v5, %v2926_v4  ;;  %v2928_v7 = vld [vmem:[%s4050_s12 + $0x70] sm:$0xff] }
 0xe82   : > { %3149 = vmatprep.subr.mxu1 %v3433_v13  ;;  %v3358_v11 = vpop.eup %3357 }
 0xe83   : > { %v2176_v12 = vmul.f32 %v3358_v11, %v3350_v60  ;;  %v2920_v11 = vld [vmem:[%s4049_s11 + $0x1] ss:$0 sm:$0xff] }
 0xe84   : > { %3142 = vmatmul.mubr.msk.f32.vlgmr.msra.gmra.mrb[20].mxu1 %vm653_vm2, %v2009_v23  ;;  %v2929_v23 = vld [vmem:[%s4050_s12 + $0x78] sm:$0xff] }
 0xe85   : > { %3150 = vmatpush3.msra.mxu1 %v2178_v9  ;;  %3151 = vmatprep.mubr.msk.f32.mxu1 %vm3432_vm1, %v3433_v13  ;;  %v3263_v9 = vpack.c.bf16 %v2929_v23, %v2928_v7 }
 0xe86   : > { %3159 = vmatprep.subr.mxu1 %v3433_v13  ;;  %v3360_v14 = vpop.eup %3359 }
 0xe87   : > { %v2343_v16 = vmul.f32 %v3360_v14, %v3352_v62  ;;  %v2922_v62 = vld [vmem:[%s4050_s12 + $0x40] sm:$0xff] }
 0xe88   : > { %3152 = vmatmul.mubr.msk.f32.vlgmr.msra.gmra.mrb[22].mxu1 %vm653_vm2, %v2176_v12  ;;  %v3254_v0 = vpack.c.bf16 %v2923_v63, %v2922_v62 }
 0xe89   : > { %3160 = vmatpush3.msra.mxu1 %v2345_v15  ;;  %3161 = vmatprep.mubr.msk.f32.mxu1 %vm3432_vm1, %v3433_v13 }
 0xe8a   : > { %3247 = vmatprep.subr.bf16.mxu1 %v3431_v10 }
 0xe8c   : > { %3162 = vmatmul.mubr.msk.f32.vlgmr.msra.gmra.mrb[24].mxu1 %vm653_vm2, %v2343_v16 }
 0xe8d   : > { %3183 = vmatprep.mubr.msk.f32.mxu1 %vm3432_vm1, %v3433_v13 }
 0xf53   : > { %v1915_v24 = vpop.f32.mrb[18].mxu1 }
 0xf54   : > { %v3133_v25 = vpop.f32.mrb[19].mxu1 }
 0xf57   : > { %v2082_v27 = vpop.f32.mrb[20].mxu1 }
 0xf58   : > { %2421 = vrot.lane.b32.xlu0 %v2082_v27, %s4094_s29  ;;  %v3143_v28 = vpop.f32.mrb[21].mxu1  ;;  %s3367_s29 = scalar_lea.vmem %s3997_s17, 128 }
 0xf59   : > { %p3368_p11 = scmp.ne.s32.totalorder %s3997_s17, %s3367_s29 }
 0xf5b   : > { %v2249_v29 = vpop.f32.mrb[22].mxu1  ;;  %p3369_p12 = pnand %p3368_p11, %p3572_p5 }
 0xf5c   : > { %2425 = vrot.lane.b32.xlu1 %v2249_v29, %s4095_s27  ;;  %v3153_v30 = vpop.f32.mrb[23].mxu1  ;;  %s3373_s27 = scalar_lea.vmem %s3372_s28, 256 }
 0xf5d   : > { %p3370_p13 = pneg %p3369_p12  ;;  %p3375_p1 = scmp.lt.s32.totalorder %s3373_s27, %s3367_s29 }
 0xf5f   : > { %v2416_v31 = vpop.f32.mrb[24].mxu1  ;;  %p3376_p2 = por %p3375_p1, %p3374_p0 }
 0xf60   : > { %2429 = vrot.lane.b32.xlu0 %v2416_v31, %s4096_s26  ;;  %v3163_v32 = vpop.f32.mrb[25].mxu1 }
 0xf61   : > { %p3377_p3 = pnand %p3376_p2, %p3370_p13 }
 0xfca   : > { %v2422_v26 = vpop.permute.xlu0 %2421 }
 0xfcb   : > { %v2432_v34 = vsel %vm653_vm2, %v1915_v24, %v2422_v26 }
 0xfce   : > { %v2426_v33 = vpop.permute.xlu1 %2425 }
 0xfcf   : > { %v2433_v35 = vsel %vm1337_vm3, %v2432_v34, %v2426_v33 }
 0xfd2   : > { %v2430_v36 = vpop.permute.xlu0 %2429 }
 0xfd3   : > { %v2434_v37 = vsel %vm1339_vm4, %v2433_v35, %v2430_v36 }
 0xfd4   : > { %3173 = vmatmul.mubr.msk.f32.vlgmr.msra.gmra.mrb[16].mxu0 %vm534_vm0, %v2434_v37 }
 0xfd5   : > { %3202 = vmatprep.mubr.msk.f32.mxu0 %vm3432_vm1, %v3433_v13  ;;  %v2915_v13 = vld [vmem:[%s4048_s10 + $0x20] sm:$0xff]  ;;  %3255 = vmatpush3.bf16.msra.mxu0 %v3254_v0 }
 0xfd6   : > { %v3248_v51 = vpack.c.bf16 %v2916_v50, %v2915_v13  ;;  %3256 = vmatprep.subr.bf16.mxu0 %v3431_v10 }
 0xfd8   : > { %3249 = vmatpush3.bf16.msra.mxu1 %v3248_v51 }
 0xfd9   : > { %3250 = vmatprep.subr.bf16.mxu1 %v3431_v10  ;;  %3258 = vmatpush3.bf16.msra.mxu0 %v3257_v3 }
 0xfda   : > { %3259 = vmatprep.subr.bf16.mxu0 %v3431_v10 }
 0xfdd   : > { %3261 = vmatpush3.bf16.msra.mxu0 %v3260_v6 }
 0xfde   : > { %3262 = vmatprep.subr.bf16.mxu0 %v3431_v10  ;;  %v2931_v10 = vld [vmem:[%s4051_s13 + $0x1] ss:$0 sm:$0xff] }
 0xfe1   : > { %3264 = vmatpush3.bf16.msra.mxu0 %v3263_v9 }
0x10a7   : > { %v2517_v39 = vpop.f32.mrb[16].mxu0 }
0x10a8   : > { %v2518_v40 = vadd.f32 %v2909_v38, %v2517_v39  ;;  %v3174_v42 = vpop.f32.mrb[17].mxu0 }
0x10aa   : > { %v2521_v43 = vadd.f32 %v2518_v40, %v3817_v8  ;;  %v2917_v8 = vld [vmem:[%s4048_s10 + $0x30] sm:$0xff]  ;;  %v2935_v40 = vld [vmem:[%s4052_s14 + $0x1] ss:$0 sm:$0xff] }
0x10ab   : > { %v3251_v41 = vpack.c.bf16 %v2918_v52, %v2917_v8 }
0x10ac   : > { %v2526_v44 = vsel %vm534_vm0, %v2521_v43, 0.0 }
0x10ad   : > { %2527 = vadd.xlane.f32.xlu1 %v2526_v44  ;;  %3252 = vmatpush3.bf16.msra.mxu1 %v3251_v41 }
0x113a   : > { %v2528_v45 = vpop.xlane.xlu1 %2527 }
0x113b   : > { %v2529_v46 = vmul.f32 0.03125, %v2528_v45 }
0x113d   : > { %v2530_v47 = vsub.f32 %v2521_v43, %v2529_v46  ;;  %v2936_v43 = vld [vmem:[%s4053_s15 + $0x1] ss:$0 sm:$0xff] }
0x113f   : > { %v2531_v48 = vmul.f32 %v2530_v47, %v2530_v47 }
0x1141   : > { %v2532_v49 = vsel %vm534_vm0, %v2531_v48, 0.0 }
0x1142   : > { %2533 = vadd.xlane.f32.xlu0 %v2532_v49 }
0x11cf   : > { %v2534_v53 = vpop.xlane.xlu0 %2533 }
0x11d0   : > { %v2535_v54 = vmul.f32 0.03125, %v2534_v53 }
0x11d2   : > { %v2536_v55 = vadd.f32 1e-12, %v2535_v54 }
0x11d4   : > { %3361 = vrsqrt.f32 %v2536_v55 }
0x11de   : > { %v3362_v56 = vpop.eup %3361 }
0x11df   : > { %v2538_v58 = vmul.f32 %v3362_v56, %v2530_v47 }
0x11e1   : > { %v2545_v60 = vmul.f32 %v2913_v57, %v2538_v58 }
0x11e3   : > { %v2552_v61 = vadd.f32 %v2914_v59, %v2545_v60 }
0x11e5   : > { %3184 = vmatmul.mubr.msk.f32.vlgmr.msra.gmra.mrb[26].mxu1 %vm534_vm0, %v2552_v61 }
0x12b8   : > { %v2635_v12 = vpop.f32.mrb[26].mxu1 }
0x12b9   : > { %v2636_v14 = vadd.f32 %v2920_v11, %v2635_v12  ;;  %v3185_v15 = vpop.f32.mrb[27].mxu1 }
0x12bb   : > { %v2640_v16 = vmul.f32 0.044715, %v2636_v14  ;;  %v2639_v22 = vmul.f32 0.5, %v2636_v14 }
0x12bd   : > { %v2641_v17 = vmul.f32 %v2640_v16, %v2636_v14 }
0x12bf   : > { %v2642_v18 = vmul.f32 %v2641_v17, %v2636_v14 }
0x12c1   : > { %v2643_v19 = vadd.f32 %v2642_v18, %v2636_v14 }
0x12c3   : > { %v2644_v20 = vmul.f32 0.7978846, %v2643_v19 }
0x12c5   : > { %3363 = vtanh.f32 %v2644_v20 }
0x12cf   : > { %v3364_v21 = vpop.eup %3363 }
0x12d0   : > { %v2646_v24 = vadd.f32 1.0, %v3364_v21 }
0x12d2   : > { %v2647_v25 = vmul.f32 %v2646_v24, %v2639_v22 }
0x12d4   : > { %3203 = vmatmul.mubr.msk.f32.vlgmr.msra.gmra.mrb[18].mxu0 %vm1563_vm5, %v2647_v25 }
0x13a7   : > { %v2734_v27 = vpop.f32.mrb[18].mxu0 }
0x13a8   : > { %v2735_v28 = vadd.f32 %v2931_v10, %v2734_v27  ;;  %v3204_v29 = vpop.f32.mrb[19].mxu0 }
0x13aa   : > { %v2738_v30 = vadd.f32 %v2735_v28, %v2552_v61 }
0x13ac   : > { %v2743_v31 = vsel %vm534_vm0, %v2738_v30, 0.0 }
0x13ad   : > { %2744 = vadd.xlane.f32.xlu0 %v2743_v31 }
0x143a   : > { %v2745_v32 = vpop.xlane.xlu0 %2744 }
0x143b   : > { %v2746_v26 = vmul.f32 0.03125, %v2745_v32 }
0x143d   : > { %v2747_v33 = vsub.f32 %v2738_v30, %v2746_v26 }
0x143f   : > { %v2748_v34 = vmul.f32 %v2747_v33, %v2747_v33 }
0x1441   : > { %v2749_v35 = vsel %vm534_vm0, %v2748_v34, 0.0 }
0x1442   : > { %2750 = vadd.xlane.f32.xlu1 %v2749_v35 }
0x14cf   : > { %v2751_v36 = vpop.xlane.xlu1 %2750 }
0x14d0   : > { %v2752_v37 = vmul.f32 0.03125, %v2751_v36 }
0x14d2   : > { %v2753_v38 = vadd.f32 1e-12, %v2752_v37 }
0x14d4   : > { %3365 = vrsqrt.f32 %v2753_v38 }
0x14de   : > { %v3366_v39 = vpop.eup %3365 }
0x14df   : > { %v2755_v42 = vmul.f32 %v3366_v39, %v2747_v33 }
0x14e1   : > { %v2762_v44 = vmul.f32 %v2935_v40, %v2755_v42 }
0x14e3   : > { %v2769_v45 = vadd.f32 %v2936_v43, %v2762_v44 }
0x14e5   : > { %2770 = vst.msk [vmem:[%s523_s18] sm:$0xff] %vm534_vm0, %v2769_v45 }
0x14e6   : > { %3380 = shalt.err (!%p3377_p3)
}
0x14e7   : > { %s3381_s1 = scalar_lea.hbm %s3995_s2, 128  ;;  %s3385_s19 = scalar_lea.hbm %s4054_s16, 256 }
0x14e8   : > { %p3382_p4 = scmp.ne.s32.totalorder %s3995_s2, %s3381_s1  ;;  %p3386_p9 = scmp.lt.u32.totalorder %s3995_s2, %s4054_s16 }
0x14e9   : > { %p3387_p10 = scmp.lt.u32.totalorder %s3385_s19, %s3381_s1  ;;  %p3389_p12 = scmp.lt.u32.totalorder %s3381_s1, %s3995_s2 }
0x14ea   : > { %p3383_p7 = pnand %p3382_p4, %p3572_p5 }
0x14eb   : > { %p3388_p11 = por %p3387_p10, %p3386_p9 }
0x14ec   : > { %p3384_p8 = pneg %p3383_p7 }
0x14ed   : > { %p3390_p13 = por %p3389_p12, %p3388_p11 }
0x14ef   : > { %p3391_p0 = pnand %p3390_p13, %p3384_p8 }
0x14f1   : > { %3394 = shalt.err (!%p3391_p0)
}
0x14f2   : > { %3265 = dma.vmem_to_hbm [thread:$0]  (%p3572_p5), %s3997_s17, 128, %s3995_s2, %s2772_s30  }
0x14f3 PF: > { %p3271_p1 = scmp.ge.s32.totalorder %s3429_s24, 2  ;;  %s2797_s25 = sand.u32 1, %s3417_s21  }
0x14f4   : > { %s2798_s28 = scalar_lea.sflag [#allocation3], %s2797_s25 }
0x14f5   : > { %p3268_p2 = pnand %p3271_p1, %p3576_p6 }
0x14f7   : > { %3412 = dma.done.wait (!%p3268_p2), %s2798_s28, 128  }
0x14f8   : > { %3414 = vsyncadd (!%p3268_p2), %s2798_s28, 4294967168  ;;  %s4098_s24 = sld [smem:[#allocation6_spill]]  ;;  %s4099_s27 = sld [smem:[#allocation5_spill]] }
0x14f9   : > { %s4100_s23 = sld [smem:[#allocation7_spill]]  ;;  %s4101_s21 = smov %s3421_s22 }
0x14fe   : > { %p26_p3 = scmp.ge.s32.totalorder %s4098_s24, 4   ;;  %s4102_s22 = smov %s4099_s27 }
0x1500   :  { %28 = sbr.rel (!%p26_p3) target bundleno = 7 (0x7), region = 134 }
0x1507   :  { %2803 = vsyncpa [#allocation3], 1 }
0x1508   :  { %2805 = vsyncpa [#allocation3 + $0x1], 1 }

</bundles_post_ra>
